<compile_context>
chip_gen: v5e
topology: v5e:2x2
jax: 0.10.0
libtpu: 0.0.40
codegen_flags: <defaults>
</compile_context>

<pallas_src>
import jax
import jax.numpy as jnp
from jax.experimental import pallas as pl
from jax.experimental.pallas import tpu as pltpu

EPS = 1e-5


# ---------------------------------------------------------------------------
# Helpers
# ---------------------------------------------------------------------------
def _round_up(x, m):
    return (x + m - 1) // m * m


def _pick_tile(n, target):
    """Tile size for a length-n axis, <= max(target, n rounded to 8).

    Preference order: (1) n itself (rounded up to a sublane multiple) if it
    fits the target, (2) the largest 128-multiple divisor of n <= target,
    (3) the largest 8-multiple divisor of n <= target, (4) a 128-aligned tile
    (the caller must then pad n up to a tile multiple and mask)."""
    if n <= target:
        return _round_up(n, 8)
    t = target - target % 128
    while t >= 128:
        if n % t == 0:
            return t
        t -= 128
    t = target - target % 8
    while t >= 8:
        if n % t == 0:
            return t
        t -= 8
    return max(128, target - target % 128)


def _vmem_limit_bytes(tq, tk, cp):
    """Tight per-step VMEM footprint estimate (+50% headroom), capped at
    48 MiB so the same config is safe on v7x's 64 MiB per-TC VMEM."""
    bf2, f4 = 2, 4
    feats = 2 * (tq * cp * bf2) + 2 * 2 * (tk * cp * bf2)   # q + (k, v), dbl-buffered
    out_buf = 2 * tq * cp * f4                              # output block, dbl-buffered
    scratch = tq * cp * f4 + 2 * tq * f4                    # acc, m, l
    interm = 4 * tq * tk * f4 + tk * cp * bf2 + tq * cp * f4
    total = feats + out_buf + scratch + interm
    return int(min(48 << 20, max(16 << 20, int(1.5 * total))))


def _mean_variance_norm(x):
    """Per-channel, full-spatial mean/variance norm (unbiased var, torch-style)."""
    B, C, H, W = x.shape
    hw = H * W
    flat = x.reshape(B, C, hw)
    mean = jnp.mean(flat, axis=2, keepdims=True)
    d = flat - mean
    var = jnp.sum(d * d, axis=2, keepdims=True) / max(hw - 1, 1)
    return (d * jax.lax.rsqrt(var + EPS)).reshape(B, C, H, W)


# ---------------------------------------------------------------------------
# Wrapper + kernel
# ---------------------------------------------------------------------------
def attention_block(content, style, params, *, q_tile_target=1024, kv_tile_target=1024):
    """content, style: (B, C, H, W) float32 (NCHW, like PyTorch).
    params: wq,bq,wk,bk,wv,bv,wo,bo with conv weights (C,C,1,1), biases (C,)."""
    B, C, H, W = content.shape
    HW = H * W
    Cp = _round_up(max(C, 128), 128)            # lane-dense channel axis

    # ---- wrapper-side preprocessing (memory-bound; fused by XLA) ----------
    cn = _mean_variance_norm(content)
    sn = _mean_variance_norm(style)

    def to_seq(x):                              # (B, C, H, W) -> (B, HW, C)
        return jnp.transpose(x.reshape(B, C, HW), (0, 2, 1))

    def conv_w(name):                           # (C,C,1,1) -> (C_in, C_out) bf16
        return jnp.transpose(params[name].reshape(C, C), (1, 0)).astype(jnp.bfloat16)

    def conv_b(name):
        return params[name].reshape(1, C).astype(jnp.float32)

    # Q/K/V projections hoisted out of the grid: one big GEMM each (bf16
    # operands, f32 accumulation) instead of being recomputed per q tile.
    def project(x_seq, wname, bname):
        y = jnp.dot(x_seq.astype(jnp.bfloat16), conv_w(wname),
                    preferred_element_type=jnp.float32) + conv_b(bname)
        return y.astype(jnp.bfloat16)

    q = project(to_seq(cn), "wq", "bq")
    k = project(to_seq(sn), "wk", "bk")
    v = project(to_seq(style), "wv", "bv")

    # ---- tiling / padding ---------------------------------------------------
    tq = _pick_tile(HW, q_tile_target)
    tk = _pick_tile(HW, kv_tile_target)

    hw_q = _round_up(HW, tq)
    # v7x has two TensorCores: at B == 1, keep >= 2 tiles on a "parallel" axis.
    if B == 1 and hw_q == tq and tq >= 256 and (tq // 2) % 8 == 0:
        tq //= 2
        hw_q = _round_up(HW, tq)
    hw_kv = _round_up(HW, tk)
    n_q = hw_q // tq
    n_kv = hw_kv // tk
    kv_needs_mask = hw_kv != HW                 # static: only emit mask if needed

    def pad_to(x, rows):
        pr, pc = rows - x.shape[1], Cp - x.shape[2]
        if pr or pc:
            x = jnp.pad(x, ((0, 0), (0, pr), (0, pc)))
        return x

    q = pad_to(q, hw_q)
    k = pad_to(k, hw_kv)
    v = pad_to(v, hw_kv)

    # ---- pure flash-attention core -----------------------------------------
    def kernel(q_ref, k_ref, v_ref, out_ref, m_sc, l_sc, acc_sc):
        ki = pl.program_id(2)

        @pl.when(ki == 0)
        def _init():
            m_sc[...] = jnp.full_like(m_sc, -jnp.inf)
            l_sc[...] = jnp.zeros_like(l_sc)
            acc_sc[...] = jnp.zeros_like(acc_sc)

        # Energy tile (tq, tk): contract channel axes directly (no K transpose).
        e = jax.lax.dot_general(q_ref[0], k_ref[0], (((1,), (1,)), ((), ())),
                                preferred_element_type=jnp.float32)
        if kv_needs_mask:
            col = ki * tk + jax.lax.broadcasted_iota(jnp.int32, (1, tk), 1)
            e = jnp.where(col < HW, e, -1e30)

        # Online softmax update.  exp kept in f32 so the same kernel is
        # correct/fast on v5e (no bf16 EUP there); bf16 only for MXU operands.
        m_prev = m_sc[...]
        m_new = jnp.maximum(m_prev, jnp.max(e, axis=-1, keepdims=True))
        alpha = jnp.exp(m_prev - m_new)
        p = jnp.exp(e - m_new)
        l_sc[...] = alpha * l_sc[...] + jnp.sum(p, axis=-1, keepdims=True)
        acc_sc[...] = alpha * acc_sc[...] + jnp.dot(
            p.astype(jnp.bfloat16), v_ref[0], preferred_element_type=jnp.float32)
        m_sc[...] = m_new

        @pl.when(ki == pl.num_programs(2) - 1)
        def _finalize():
            out_ref[0] = (acc_sc[...] *
                          pl.reciprocal(l_sc[...], approx=True)).astype(out_ref.dtype)

    attn_seq = pl.pallas_call(
        kernel,
        out_shape=jax.ShapeDtypeStruct((B, hw_q, Cp), jnp.float32),
        grid_spec=pltpu.PrefetchScalarGridSpec(
            num_scalar_prefetch=0,
            grid=(B, n_q, n_kv),
            in_specs=[
                pl.BlockSpec((1, tq, Cp), lambda b, qi, ki: (b, qi, 0)),
                pl.BlockSpec((1, tk, Cp), lambda b, qi, ki: (b, ki, 0)),
                pl.BlockSpec((1, tk, Cp), lambda b, qi, ki: (b, ki, 0)),
            ],
            out_specs=pl.BlockSpec((1, tq, Cp), lambda b, qi, ki: (b, qi, 0)),
            scratch_shapes=[
                pltpu.VMEM((tq, 1), jnp.float32),     # running max
                pltpu.VMEM((tq, 1), jnp.float32),     # running sum
                pltpu.VMEM((tq, Cp), jnp.float32),    # output accumulator
            ]),
        compiler_params=pltpu.CompilerParams(
            dimension_semantics=("parallel", "parallel", "arbitrary"),
            vmem_limit_bytes=_vmem_limit_bytes(tq, tk, Cp)),
    )(q, k, v)

    # ---- wrapper-side epilogue ----------------------------------------------
    attn = attn_seq[:, :HW, :C]                  # drop spatial / channel padding
    # Output 1x1 conv as one big f32 GEMM over the full result, then residual.
    wo = jnp.transpose(params["wo"].reshape(C, C), (1, 0)).astype(jnp.float32)
    out = jnp.dot(attn, wo, preferred_element_type=jnp.float32) \
        + params["bo"].reshape(1, C).astype(jnp.float32)
    out = jnp.transpose(out, (0, 2, 1)).reshape(B, C, H, W)
    return (out + content).astype(content.dtype)


# ---------------------------------------------------------------------------
# Pure-JAX reference mirroring the PyTorch forward exactly
# ---------------------------------------------------------------------------
def _reference(content, style, params):
    B, C, H, W = content.shape
    HW = H * W

    def mvn(x):
        flat = x.reshape(B, C, HW)
        mean = jnp.mean(flat, axis=2, keepdims=True)
        var = jnp.sum((flat - mean) ** 2, axis=2, keepdims=True) / (HW - 1)
        return ((flat - mean) / jnp.sqrt(var + EPS)).reshape(B, C, H, W)

    def conv1x1(x, w, b):
        wm = w.reshape(C, C)
        return jnp.einsum("oc,bchw->bohw", wm, x) + b.reshape(1, C, 1, 1)

    q = conv1x1(mvn(content), params["wq"], params["bq"])
    k = conv1x1(mvn(style), params["wk"], params["bk"])
    v = conv1x1(style, params["wv"], params["bv"])

    qf = jnp.transpose(q.reshape(B, C, HW), (0, 2, 1))
    kf = k.reshape(B, C, HW)
    vf = v.reshape(B, C, HW)

    energy = jnp.einsum("bqc,bck->bqk", qf, kf)
    attn = jax.nn.softmax(energy, axis=-1)
    out = jnp.einsum("bck,bqk->bcq", vf, attn).reshape(B, C, H, W)
    out = conv1x1(out, params["wo"], params["bo"])
    return out + content


if __name__ == "__main__":
    B, C, H, W = 2, 4, 16, 16
    key = jax.random.PRNGKey(0)
    keys = jax.random.split(key, 10)

    content = jax.random.normal(keys[0], (B, C, H, W), jnp.float32)
    style = jax.random.normal(keys[1], (B, C, H, W), jnp.float32)

    def init_conv(kw, kb):
        bound = 1.0 / (C ** 0.5)
        w = jax.random.uniform(kw, (C, C, 1, 1), jnp.float32, -bound, bound)
        b = jax.random.uniform(kb, (C,), jnp.float32, -bound, bound)
        return w, b

    params = {}
    params["wq"], params["bq"] = init_conv(keys[2], keys[3])
    params["wk"], params["bk"] = init_conv(keys[4], keys[5])
    params["wv"], params["bv"] = init_conv(keys[6], keys[7])
    params["wo"], params["bo"] = init_conv(keys[8], keys[9])

    out = jax.jit(attention_block)(content, style, params)
    out = jax.block_until_ready(out)

    ref = _reference(content, style, params)
    assert out.shape == (B, C, H, W)
    max_err = float(jnp.max(jnp.abs(out - ref)))
    # bf16 MXU operands (f32 accumulation) => looser tolerance than pure f32.
    assert jnp.allclose(out, ref, atol=5e-2, rtol=5e-2), max_err

    print("KERNEL_OK")
</pallas_src>

<mosaic_0001>
module attributes {stable_mosaic.version = 11 : i64} {
  func.func @kernel(%arg0: i32, %arg1: i32, %arg2: i32, %arg3: memref<1x256x128xbf16, #tpu.memory_space<vmem>>, %arg4: memref<1x256x128xbf16, #tpu.memory_space<vmem>>, %arg5: memref<1x256x128xbf16, #tpu.memory_space<vmem>>, %arg6: memref<1x256x128xf32, #tpu.memory_space<vmem>>, %arg7: memref<256x1xf32, #tpu.memory_space<vmem>>, %arg8: memref<256x1xf32, #tpu.memory_space<vmem>>, %arg9: memref<256x128xf32, #tpu.memory_space<vmem>>) attributes {dimension_semantics = [#tpu.dimension_semantics<parallel>, #tpu.dimension_semantics<parallel>, #tpu.dimension_semantics<arbitrary>], iteration_bounds = array<i64: 2, 1, 1>, scalar_prefetch = 0 : i64, scratch_operands = 3 : i64, tpu.core_type = #tpu.core_type<tc>, window_params = [{transform_indices = @transform_0, window_bounds = array<i64: 1, 256, 128>}, {transform_indices = @transform_1, window_bounds = array<i64: 1, 256, 128>}, {transform_indices = @transform_2, window_bounds = array<i64: 1, 256, 128>}, {transform_indices = @transform_3, window_bounds = array<i64: 1, 256, 128>}]} {
    %c0_i32 = arith.constant 0 : i32
    %0 = arith.cmpi eq, %arg2, %c0_i32 : i32
    %1 = arith.extui %0 : i1 to i32
    %c0_i32_0 = arith.constant 0 : i32
    %2 = arith.cmpi ne, %1, %c0_i32_0 : i32
    scf.if %2 {
      %cst_26 = arith.constant 0xFF800000 : f32
      %36 = vector.broadcast %cst_26 : f32 to vector<256x1xf32>
      %c0_27 = arith.constant 0 : index
      %c0_28 = arith.constant 0 : index
      %37 = vector.load %arg7[%c0_27, %c0_28] : memref<256x1xf32, #tpu.memory_space<vmem>>, vector<256x1xf32>
      tpu.vector_store %arg7[%c0_27, %c0_28], %36 {strides = array<i32>} : memref<256x1xf32, #tpu.memory_space<vmem>>, vector<256x1xf32>,
      %cst_29 = arith.constant 0.000000e+00 : f32
      %38 = vector.broadcast %cst_29 : f32 to vector<256x1xf32>
      %c0_30 = arith.constant 0 : index
      %c0_31 = arith.constant 0 : index
      %39 = vector.load %arg8[%c0_30, %c0_31] : memref<256x1xf32, #tpu.memory_space<vmem>>, vector<256x1xf32>
      tpu.vector_store %arg8[%c0_30, %c0_31], %38 {strides = array<i32>} : memref<256x1xf32, #tpu.memory_space<vmem>>, vector<256x1xf32>,
      %cst_32 = arith.constant 0.000000e+00 : f32
      %40 = vector.broadcast %cst_32 : f32 to vector<256x128xf32>
      %c0_33 = arith.constant 0 : index
      %c0_34 = arith.constant 0 : index
      %41 = vector.load %arg9[%c0_33, %c0_34] : memref<256x128xf32, #tpu.memory_space<vmem>>, vector<256x128xf32>
      tpu.vector_store %arg9[%c0_33, %c0_34], %40 {strides = array<i32>} : memref<256x128xf32, #tpu.memory_space<vmem>>, vector<256x128xf32>,
    } else {
    }
    %c0 = arith.constant 0 : index
    %c0_1 = arith.constant 0 : index
    %c0_2 = arith.constant 0 : index
    %3 = vector.load %arg3[%c0, %c0_1, %c0_2] : memref<1x256x128xbf16, #tpu.memory_space<vmem>>, vector<1x256x128xbf16>
    %4 = vector.shape_cast %3 : vector<1x256x128xbf16> to vector<256x128xbf16>
    %c0_3 = arith.constant 0 : index
    %c0_4 = arith.constant 0 : index
    %c0_5 = arith.constant 0 : index
    %5 = vector.load %arg4[%c0_3, %c0_4, %c0_5] : memref<1x256x128xbf16, #tpu.memory_space<vmem>>, vector<1x256x128xbf16>
    %6 = vector.shape_cast %5 : vector<1x256x128xbf16> to vector<256x128xbf16>
    %cst = arith.constant dense<0.000000e+00> : vector<256x256xf32>
    %7 = tpu.matmul %4, %6, %cst {dimension_numbers = #tpu.dot_dimension_numbers<[1], [1], [0], [0], [0, 0, 1, 0], [], []>} : vector<256x128xbf16>, vector<256x128xbf16>, vector<256x256xf32> -> vector<256x256xf32>
    %c0_6 = arith.constant 0 : index
    %c0_7 = arith.constant 0 : index
    %8 = vector.load %arg7[%c0_6, %c0_7] : memref<256x1xf32, #tpu.memory_space<vmem>>, vector<256x1xf32>
    %cst_8 = arith.constant dense<0xFF800000> : vector<256xf32>
    %9 = vector.multi_reduction <maximumf>, %7, %cst_8 [1] : vector<256x256xf32> to vector<256xf32>
    %10 = vector.shape_cast %9 : vector<256xf32> to vector<256x1xf32>
    %11 = arith.maximumf %8, %10 : vector<256x1xf32>
    %12 = arith.subf %8, %11 : vector<256x1xf32>
    %13 = math.exp %12 : vector<256x1xf32>
    %14 = vector.broadcast %11 : vector<256x1xf32> to vector<256x256xf32>
    %15 = arith.subf %7, %14 : vector<256x256xf32>
    %16 = math.exp %15 : vector<256x256xf32>
    %c0_9 = arith.constant 0 : index
    %c0_10 = arith.constant 0 : index
    %17 = vector.load %arg8[%c0_9, %c0_10] : memref<256x1xf32, #tpu.memory_space<vmem>>, vector<256x1xf32>
    %18 = arith.mulf %13, %17 : vector<256x1xf32>
    %cst_11 = arith.constant dense<0.000000e+00> : vector<256xf32>
    %19 = vector.multi_reduction <add>, %16, %cst_11 [1] : vector<256x256xf32> to vector<256xf32>
    %20 = vector.shape_cast %19 : vector<256xf32> to vector<256x1xf32>
    %21 = arith.addf %18, %20 : vector<256x1xf32>
    %c0_12 = arith.constant 0 : index
    %c0_13 = arith.constant 0 : index
    %22 = vector.load %arg8[%c0_12, %c0_13] : memref<256x1xf32, #tpu.memory_space<vmem>>, vector<256x1xf32>
    tpu.vector_store %arg8[%c0_12, %c0_13], %21 {strides = array<i32>} : memref<256x1xf32, #tpu.memory_space<vmem>>, vector<256x1xf32>,
    %c0_14 = arith.constant 0 : index
    %c0_15 = arith.constant 0 : index
    %23 = vector.load %arg9[%c0_14, %c0_15] : memref<256x128xf32, #tpu.memory_space<vmem>>, vector<256x128xf32>
    %24 = vector.broadcast %13 : vector<256x1xf32> to vector<256x128xf32>
    %25 = arith.mulf %24, %23 : vector<256x128xf32>
    %26 = arith.truncf %16 : vector<256x256xf32> to vector<256x256xbf16>
    %c0_16 = arith.constant 0 : index
    %c0_17 = arith.constant 0 : index
    %c0_18 = arith.constant 0 : index
    %27 = vector.load %arg5[%c0_16, %c0_17, %c0_18] : memref<1x256x128xbf16, #tpu.memory_space<vmem>>, vector<1x256x128xbf16>
    %28 = vector.shape_cast %27 : vector<1x256x128xbf16> to vector<256x128xbf16>
    %cst_19 = arith.constant dense<0.000000e+00> : vector<256x128xf32>
    %29 = tpu.matmul %26, %28, %cst_19 {dimension_numbers = #tpu.dot_dimension_numbers<[1], [0], [0], [1], [0, 0, 1, 1], [], []>} : vector<256x256xbf16>, vector<256x128xbf16>, vector<256x128xf32> -> vector<256x128xf32>
    %30 = arith.addf %25, %29 : vector<256x128xf32>
    %c0_20 = arith.constant 0 : index
    %c0_21 = arith.constant 0 : index
    %31 = vector.load %arg9[%c0_20, %c0_21] : memref<256x128xf32, #tpu.memory_space<vmem>>, vector<256x128xf32>
    tpu.vector_store %arg9[%c0_20, %c0_21], %30 {strides = array<i32>} : memref<256x128xf32, #tpu.memory_space<vmem>>, vector<256x128xf32>,
    %c0_22 = arith.constant 0 : index
    %c0_23 = arith.constant 0 : index
    %32 = vector.load %arg7[%c0_22, %c0_23] : memref<256x1xf32, #tpu.memory_space<vmem>>, vector<256x1xf32>
    tpu.vector_store %arg7[%c0_22, %c0_23], %11 {strides = array<i32>} : memref<256x1xf32, #tpu.memory_space<vmem>>, vector<256x1xf32>,
    %c0_i32_24 = arith.constant 0 : i32
    %33 = arith.cmpi eq, %arg2, %c0_i32_24 : i32
    %34 = arith.extui %33 : i1 to i32
    %c0_i32_25 = arith.constant 0 : i32
    %35 = arith.cmpi ne, %34, %c0_i32_25 : i32
    scf.if %35 {
      %c0_26 = arith.constant 0 : index
      %c0_27 = arith.constant 0 : index
      %36 = vector.load %arg9[%c0_26, %c0_27] : memref<256x128xf32, #tpu.memory_space<vmem>>, vector<256x128xf32>
      %c0_28 = arith.constant 0 : index
      %c0_29 = arith.constant 0 : index
      %37 = vector.load %arg8[%c0_28, %c0_29] : memref<256x1xf32, #tpu.memory_space<vmem>>, vector<256x1xf32>
      %38 = tpu.reciprocal %37 {approx = true} : vector<256x1xf32> -> vector<256x1xf32>
      %39 = vector.broadcast %38 : vector<256x1xf32> to vector<256x128xf32>
      %40 = arith.mulf %36, %39 : vector<256x128xf32>
      %c0_30 = arith.constant 0 : index
      %c0_31 = arith.constant 0 : index
      %c0_32 = arith.constant 0 : index
      %41 = vector.load %arg6[%c0_30, %c0_31, %c0_32] : memref<1x256x128xf32, #tpu.memory_space<vmem>>, vector<1x256x128xf32>
      %42 = vector.shape_cast %41 : vector<1x256x128xf32> to vector<256x128xf32>
      %43 = vector.shape_cast %40 : vector<256x128xf32> to vector<1x256x128xf32>
      tpu.vector_store %arg6[%c0_30, %c0_31, %c0_32], %43 {strides = array<i32>} : memref<1x256x128xf32, #tpu.memory_space<vmem>>, vector<1x256x128xf32>,
    } else {
    }
    return
  }
  func.func @transform_0(%arg0: i32, %arg1: i32, %arg2: i32) -> (i32, i32, i32) {
    %c0_i32 = arith.constant 0 : i32
    %c0_i32_0 = arith.constant 0 : i32
    return %arg0, %arg1, %c0_i32 : i32, i32, i32
  }
  func.func @transform_1(%arg0: i32, %arg1: i32, %arg2: i32) -> (i32, i32, i32) {
    %c0_i32 = arith.constant 0 : i32
    %c0_i32_0 = arith.constant 0 : i32
    return %arg0, %arg2, %c0_i32 : i32, i32, i32
  }
  func.func @transform_2(%arg0: i32, %arg1: i32, %arg2: i32) -> (i32, i32, i32) {
    %c0_i32 = arith.constant 0 : i32
    %c0_i32_0 = arith.constant 0 : i32
    return %arg0, %arg2, %c0_i32 : i32, i32, i32
  }
  func.func @transform_3(%arg0: i32, %arg1: i32, %arg2: i32) -> (i32, i32, i32) {
    %c0_i32 = arith.constant 0 : i32
    %c0_i32_0 = arith.constant 0 : i32
    return %arg0, %arg1, %c0_i32 : i32, i32, i32
  }
}

</mosaic_0001>

<bundles_post_ra>
// kernel: attention_block.1
= control target key start
LH: loop header
LB: loop body
LE: loop exit
PB: predicated region body
PF: predicated region fallthrough
CT: control target
= control target key end

     0   :  { %s3356_s12 = smov 0   ;;  %s3358_s13 = smov 0   ;;  %s4632_s0 = inlined_call_operand.vmem [shape: bf16[2,256,128], index: 0, kind: input, shape index: {}]   ;;  %s4633_s1 = inlined_call_operand.vmem [shape: bf16[2,256,128], index: 1, kind: input, shape index: {}]   ;;  %s4634_s2 = inlined_call_operand.vmem [shape: bf16[2,256,128], index: 2, kind: input, shape index: {}]   ;;  %s4635_s3 = inlined_call_operand.vmem [shape: f32[2,256,128], index: 3, kind: output, shape index: {}]  }
   0x1   :  { %s3360_s14 = smov 0  }
   0x2 LB: > { %s32_s15 = sadd.s32 1, %s3327_s13  ;;  %p2768_p0 = scmp.ge.s32.totalorder %s3331_s14, 1  ;;  %s3331_s14 = sphi %s3360_s14, %s13_s14   ;;  %s3327_s13 = sphi %s3358_s13, %s4858_s13   ;;  %s3323_s12 = sphi %s3356_s12, %s4857_s12  }
   0x3   : > { %p34_p1 = scmp.ge.s32.totalorder %s32_s15, 2  ;;  %p199_p2 = scmp.lt.s32.totalorder %s3331_s14, 3 }
   0x5   : > { %s4860_s15 = smov (%p34_p1, %s32_s15), 0  ;;  %p200_p3 = pnand %p2768_p0, %p199_p2 }
   0x7   : > { %203 = sbr.rel (%p200_p3) target bundleno = 1682 (0x692), region = 32 }
   0xc   : > { %p250_p4 = scmp.lt.s32.totalorder %s3323_s12, 1  ;;  %vm293_vm0 = vcmask 7168   ;;  %v3333_v58 = vmov -inf  }
   0xd   : > { %294 = vst.msk [vmem:[#allocation2] sm:$0xff] %vm293_vm0, %v3333_v58 }
   0xe   : > { %s4862_s12 = smov (!%p250_p4, %s3323_s12), 1  ;;  %295 = vst.msk [vmem:[#allocation2 + $0x8] sm:$0xff] %vm293_vm0, %v3333_v58 }
   0xf   : > { %s3377_s16 = sshll.u32 %s4862_s12, 7  ;;  %296 = vst.msk [vmem:[#allocation2 + $0x10] sm:$0xff] %vm293_vm0, %v3333_v58  ;;  %s2974_s26 = sshll.u32 %s4862_s12, 8 }
  0x10   : > { %s267_s19 = scalar_lea.vmem %s4633_s1, %s3377_s16  ;;  %s3387_s22 = scalar_lea.vmem %s4632_s0, %s3377_s16  ;;  %297 = vst.msk [vmem:[#allocation2 + $0x18] sm:$0xff] %vm293_vm0, %v3333_v58 }
  0x11   : > { %v2998_v0 = vld [vmem:[%s267_s19 + $0x38] sm:$0xff]  ;;  %v2997_v2 = vld [vmem:[%s267_s19 + $0x30] sm:$0xff]  ;;  %v2996_v4 = vld [vmem:[%s267_s19 + $0x28] sm:$0xff]  ;;  %298 = vst.msk [vmem:[#allocation2 + $0x20] sm:$0xff] %vm293_vm0, %v3333_v58  ;;  %s3705_s25 = scalar_lea.vmem %s4634_s2, %s3377_s16  ;;  %s4478_s29 = scalar_lea.vmem %s4635_s3, %s2974_s26 }
  0x12   : > { %v3006_v1 = vld [vmem:[%s267_s19 + $0x78] sm:$0xff]  ;;  %646 = vmatpush.bf16.xpose.msra.mxu0 %v2998_v0  ;;  %v3005_v3 = vld [vmem:[%s267_s19 + $0x70] sm:$0xff]  ;;  %v3004_v5 = vld [vmem:[%s267_s19 + $0x68] sm:$0xff]  ;;  %299 = vst.msk [vmem:[#allocation2 + $0x28] sm:$0xff] %vm293_vm0, %v3333_v58 }
  0x13   : > { %735 = vmatpush.bf16.xpose.msra.mxu1 %v3006_v1  ;;  %v2995_v6 = vld [vmem:[%s267_s19 + $0x20] sm:$0xff]  ;;  %v2994_v8 = vld [vmem:[%s267_s19 + $0x18] sm:$0xff]  ;;  %v2993_v10 = vld [vmem:[%s267_s19 + $0x10] sm:$0xff]  ;;  %300 = vst.msk [vmem:[#allocation2 + $0x30] sm:$0xff] %vm293_vm0, %v3333_v58 }
  0x14   : > { %v3003_v7 = vld [vmem:[%s267_s19 + $0x60] sm:$0xff]  ;;  %v3002_v9 = vld [vmem:[%s267_s19 + $0x58] sm:$0xff]  ;;  %v3001_v11 = vld [vmem:[%s267_s19 + $0x50] sm:$0xff]  ;;  %301 = vst.msk [vmem:[#allocation2 + $0x38] sm:$0xff] %vm293_vm0, %v3333_v58 }
  0x15   : > { %v2992_v12 = vld [vmem:[%s267_s19 + $0x8] sm:$0xff]  ;;  %v2991_v14 = vld [vmem:[%s267_s19] sm:$0xff]  ;;  %v2977_v18 = vld [vmem:[%s3387_s22 + $0x10] sm:$0xff]  ;;  %302 = vst.msk [vmem:[#allocation2 + $0x40] sm:$0xff] %vm293_vm0, %v3333_v58 }
  0x16   : > { %v3000_v13 = vld [vmem:[%s267_s19 + $0x48] sm:$0xff]  ;;  %v2999_v15 = vld [vmem:[%s267_s19 + $0x40] sm:$0xff]  ;;  %v2978_v19 = vld [vmem:[%s3387_s22 + $0x18] sm:$0xff]  ;;  %303 = vst.msk [vmem:[#allocation2 + $0x48] sm:$0xff] %vm293_vm0, %v3333_v58 }
  0x17   : > { %v2975_v16 = vld [vmem:[%s3387_s22] sm:$0xff]  ;;  %v2976_v17 = vld [vmem:[%s3387_s22 + $0x8] sm:$0xff]  ;;  %v2981_v22 = vld [vmem:[%s3387_s22 + $0x30] sm:$0xff]  ;;  %304 = vst.msk [vmem:[#allocation2 + $0x50] sm:$0xff] %vm293_vm0, %v3333_v58 }
  0x18   : > { %v2979_v20 = vld [vmem:[%s3387_s22 + $0x20] sm:$0xff]  ;;  %v2980_v21 = vld [vmem:[%s3387_s22 + $0x28] sm:$0xff]  ;;  %v2982_v23 = vld [vmem:[%s3387_s22 + $0x38] sm:$0xff]  ;;  %305 = vst.msk [vmem:[#allocation2 + $0x58] sm:$0xff] %vm293_vm0, %v3333_v58 }
  0x19   : > { %v2983_v24 = vld [vmem:[%s3387_s22 + $0x40] sm:$0xff]  ;;  %v2984_v36 = vld [vmem:[%s3387_s22 + $0x48] sm:$0xff]  ;;  %v2985_v60 = vld [vmem:[%s3387_s22 + $0x50] sm:$0xff]  ;;  %306 = vst.msk [vmem:[#allocation2 + $0x60] sm:$0xff] %vm293_vm0, %v3333_v58 }
  0x1a   : > { %647 = vmatpush.bf16.xpose.msra.mxu0 %v2997_v2  ;;  %307 = vst.msk [vmem:[#allocation2 + $0x68] sm:$0xff] %vm293_vm0, %v3333_v58 }
  0x1b   : > { %736 = vmatpush.bf16.xpose.msra.mxu1 %v3005_v3  ;;  %308 = vst.msk [vmem:[#allocation2 + $0x70] sm:$0xff] %vm293_vm0, %v3333_v58 }
  0x1c   : > { %309 = vst.msk [vmem:[#allocation2 + $0x78] sm:$0xff] %vm293_vm0, %v3333_v58 }
  0x1d   : > { %310 = vst.msk [vmem:[#allocation2 + $0x80] sm:$0xff] %vm293_vm0, %v3333_v58 }
  0x1e   : > { %311 = vst.msk [vmem:[#allocation2 + $0x88] sm:$0xff] %vm293_vm0, %v3333_v58 }
  0x1f   : > { %312 = vst.msk [vmem:[#allocation2 + $0x90] sm:$0xff] %vm293_vm0, %v3333_v58 }
  0x20   : > { %313 = vst.msk [vmem:[#allocation2 + $0x98] sm:$0xff] %vm293_vm0, %v3333_v58 }
  0x21   : > { %314 = vst.msk [vmem:[#allocation2 + $0xa0] sm:$0xff] %vm293_vm0, %v3333_v58 }
  0x22   : > { %648 = vmatpush.bf16.xpose.msra.mxu0 %v2996_v4  ;;  %315 = vst.msk [vmem:[#allocation2 + $0xa8] sm:$0xff] %vm293_vm0, %v3333_v58 }
  0x23   : > { %737 = vmatpush.bf16.xpose.msra.mxu1 %v3004_v5  ;;  %316 = vst.msk [vmem:[#allocation2 + $0xb0] sm:$0xff] %vm293_vm0, %v3333_v58 }
  0x24   : > { %317 = vst.msk [vmem:[#allocation2 + $0xb8] sm:$0xff] %vm293_vm0, %v3333_v58 }
  0x25   : > { %318 = vst.msk [vmem:[#allocation2 + $0xc0] sm:$0xff] %vm293_vm0, %v3333_v58 }
  0x26   : > { %319 = vst.msk [vmem:[#allocation2 + $0xc8] sm:$0xff] %vm293_vm0, %v3333_v58 }
  0x27   : > { %320 = vst.msk [vmem:[#allocation2 + $0xd0] sm:$0xff] %vm293_vm0, %v3333_v58 }
  0x28   : > { %321 = vst.msk [vmem:[#allocation2 + $0xd8] sm:$0xff] %vm293_vm0, %v3333_v58 }
  0x29   : > { %322 = vst.msk [vmem:[#allocation2 + $0xe0] sm:$0xff] %vm293_vm0, %v3333_v58 }
  0x2a   : > { %649 = vmatpush.bf16.xpose.msra.mxu0 %v2995_v6  ;;  %v3334_v6 = vmov 0   ;;  %323 = vst.msk [vmem:[#allocation2 + $0xe8] sm:$0xff] %vm293_vm0, %v3333_v58 }
  0x2b   : > { %738 = vmatpush.bf16.xpose.msra.mxu1 %v3003_v7  ;;  %3050 = vset.pattern.permute.xlu2 %v3334_v6  ;;  %324 = vst.msk [vmem:[#allocation2 + $0xf0] sm:$0xff] %vm293_vm0, %v3333_v58 }
  0x2c   : > { %3051 = vset.pattern.permute.xlu0 %v3334_v6  ;;  %3052 = vset.pattern.permute.xlu1 %v3334_v6  ;;  %325 = vst.msk [vmem:[#allocation2 + $0xf8] sm:$0xff] %vm293_vm0, %v3333_v58 }
  0x32   : > { %650 = vmatpush.bf16.xpose.msra.mxu0 %v2994_v8 }
  0x33   : > { %739 = vmatpush.bf16.xpose.msra.mxu1 %v3002_v9  ;;  %v3335_v9 = vmov 0.0  }
  0x34   : > { %326 = vst.msk [vmem:[#allocation3] sm:$0xff] %vm293_vm0, %v3335_v9 }
  0x35   : > { %327 = vst.msk [vmem:[#allocation3 + $0x8] sm:$0xff] %vm293_vm0, %v3335_v9 }
  0x36   : > { %328 = vst.msk [vmem:[#allocation3 + $0x10] sm:$0xff] %vm293_vm0, %v3335_v9 }
  0x37   : > { %329 = vst.msk [vmem:[#allocation3 + $0x18] sm:$0xff] %vm293_vm0, %v3335_v9 }
  0x38   : > { %330 = vst.msk [vmem:[#allocation3 + $0x20] sm:$0xff] %vm293_vm0, %v3335_v9 }
  0x39   : > { %331 = vst.msk [vmem:[#allocation3 + $0x28] sm:$0xff] %vm293_vm0, %v3335_v9 }
  0x3a   : > { %651 = vmatpush.bf16.xpose.msra.mxu0 %v2993_v10  ;;  %332 = vst.msk [vmem:[#allocation3 + $0x30] sm:$0xff] %vm293_vm0, %v3335_v9 }
  0x3b   : > { %740 = vmatpush.bf16.xpose.msra.mxu1 %v3001_v11  ;;  %v824_v11 = vld [vmem:[#allocation2] sm:$0xff]  ;;  %333 = vst.msk [vmem:[#allocation3 + $0x38] sm:$0xff] %vm293_vm0, %v3335_v9 }
  0x3c   : > { %334 = vst.msk [vmem:[#allocation3 + $0x40] sm:$0xff] %vm293_vm0, %v3335_v9 }
  0x3d   : > { %335 = vst.msk [vmem:[#allocation3 + $0x48] sm:$0xff] %vm293_vm0, %v3335_v9 }
  0x3e   : > { %336 = vst.msk [vmem:[#allocation3 + $0x50] sm:$0xff] %vm293_vm0, %v3335_v9 }
  0x3f   : > { %337 = vst.msk [vmem:[#allocation3 + $0x58] sm:$0xff] %vm293_vm0, %v3335_v9 }
  0x40   : > { %338 = vst.msk [vmem:[#allocation3 + $0x60] sm:$0xff] %vm293_vm0, %v3335_v9 }
  0x41   : > { %339 = vst.msk [vmem:[#allocation3 + $0x68] sm:$0xff] %vm293_vm0, %v3335_v9 }
  0x42   : > { %652 = vmatpush.bf16.xpose.msra.mxu0 %v2992_v12  ;;  %340 = vst.msk [vmem:[#allocation3 + $0x70] sm:$0xff] %vm293_vm0, %v3335_v9 }
  0x43   : > { %741 = vmatpush.bf16.xpose.msra.mxu1 %v3000_v13  ;;  %341 = vst.msk [vmem:[#allocation3 + $0x78] sm:$0xff] %vm293_vm0, %v3335_v9 }
  0x44   : > { %342 = vst.msk [vmem:[#allocation3 + $0x80] sm:$0xff] %vm293_vm0, %v3335_v9 }
  0x45   : > { %343 = vst.msk [vmem:[#allocation3 + $0x88] sm:$0xff] %vm293_vm0, %v3335_v9 }
  0x46   : > { %344 = vst.msk [vmem:[#allocation3 + $0x90] sm:$0xff] %vm293_vm0, %v3335_v9 }
  0x47   : > { %345 = vst.msk [vmem:[#allocation3 + $0x98] sm:$0xff] %vm293_vm0, %v3335_v9 }
  0x48   : > { %346 = vst.msk [vmem:[#allocation3 + $0xa0] sm:$0xff] %vm293_vm0, %v3335_v9 }
  0x49   : > { %347 = vst.msk [vmem:[#allocation3 + $0xa8] sm:$0xff] %vm293_vm0, %v3335_v9 }
  0x4a   : > { %653 = vmatpush.bf16.xpose.msra.mxu0 %v2991_v14  ;;  %348 = vst.msk [vmem:[#allocation3 + $0xb0] sm:$0xff] %vm293_vm0, %v3335_v9 }
  0x4b   : > { %742 = vmatpush.bf16.xpose.msra.mxu1 %v2999_v15  ;;  %349 = vst.msk [vmem:[#allocation3 + $0xb8] sm:$0xff] %vm293_vm0, %v3335_v9 }
  0x4c   : > { %350 = vst.msk [vmem:[#allocation3 + $0xc0] sm:$0xff] %vm293_vm0, %v3335_v9 }
  0x4d   : > { %351 = vst.msk [vmem:[#allocation3 + $0xc8] sm:$0xff] %vm293_vm0, %v3335_v9 }
  0x4e   : > { %352 = vst.msk [vmem:[#allocation3 + $0xd0] sm:$0xff] %vm293_vm0, %v3335_v9 }
  0x4f   : > { %353 = vst.msk [vmem:[#allocation3 + $0xd8] sm:$0xff] %vm293_vm0, %v3335_v9 }
  0x50   : > { %354 = vst.msk [vmem:[#allocation3 + $0xe0] sm:$0xff] %vm293_vm0, %v3335_v9 }
  0x51   : > { %654 = vmatmul.bf16.vlgmr.msra.gmra.mxu0 %v2975_v16  ;;  %355 = vst.msk [vmem:[#allocation3 + $0xe8] sm:$0xff] %vm293_vm0, %v3335_v9 }
  0x52   : > { %743 = vmatmul.bf16.vlgmr.msra.gmra.mxu1 %v2975_v16  ;;  %v2986_v16 = vld [vmem:[%s3387_s22 + $0x58] sm:$0xff]  ;;  %356 = vst.msk [vmem:[#allocation3 + $0xf0] sm:$0xff] %vm293_vm0, %v3335_v9 }
  0x53   : > { %357 = vst.msk [vmem:[#allocation3 + $0xf8] sm:$0xff] %vm293_vm0, %v3335_v9 }
  0x61   : > { %659 = vmatmul.bf16.gmra.mxu0 %v2976_v17 }
  0x62   : > { %748 = vmatmul.bf16.gmra.mxu1 %v2976_v17 }
  0x71   : > { %664 = vmatmul.bf16.gmra.mxu0 %v2977_v18 }
  0x72   : > { %753 = vmatmul.bf16.gmra.mxu1 %v2977_v18  ;;  %v3554_v18 = vld [vmem:[#allocation2 + $0x8] sm:$0xff] }
  0x81   : > { %669 = vmatmul.bf16.gmra.mxu0 %v2978_v19 }
  0x82   : > { %758 = vmatmul.bf16.gmra.mxu1 %v2978_v19 }
  0x91   : > { %674 = vmatmul.bf16.gmra.mxu0 %v2979_v20 }
  0x92   : > { %763 = vmatmul.bf16.gmra.mxu1 %v2979_v20 }
  0xa1   : > { %679 = vmatmul.bf16.gmra.mxu0 %v2980_v21 }
  0xa2   : > { %768 = vmatmul.bf16.gmra.mxu1 %v2980_v21 }
  0xb1   : > { %684 = vmatmul.bf16.gmra.mxu0 %v2981_v22 }
  0xb2   : > { %773 = vmatmul.bf16.gmra.mxu1 %v2981_v22 }
  0xc1   : > { %689 = vmatmul.bf16.gmra.mxu0 %v2982_v23 }
  0xc2   : > { %778 = vmatmul.bf16.gmra.mxu1 %v2982_v23 }
  0xce   : > { %v3398_v25 = vpop.f32.mrf.mxu0 }
  0xcf   : > { %v3400_v26 = vpop.f32.mrf.mxu1 }
  0xd0   : > { %v856_v27 = vmax.f32 %v3398_v25, %v3400_v26 }
  0xd1   : > { %694 = vmatmul.bf16.gmra.mxu0 %v2983_v24 }
  0xd2   : > { %783 = vmatmul.bf16.gmra.mxu1 %v2983_v24  ;;  %857 = vmax.xlane.f32.xlu0 %v856_v27  ;;  %v3581_v27 = vld [vmem:[#allocation2 + $0x10] sm:$0xff] }
  0xd6   : > { %v3404_v28 = vpop.f32.mrf.mxu0 }
  0xd7   : > { %v3406_v29 = vpop.f32.mrf.mxu1 }
  0xd8   : > { %v859_v30 = vmax.f32 %v3404_v28, %v3406_v29 }
  0xda   : > { %860 = vmax.xlane.f32.xlu0 %v859_v30 }
  0xde   : > { %v3410_v31 = vpop.f32.mrf.mxu0 }
  0xdf   : > { %v3412_v32 = vpop.f32.mrf.mxu1 }
  0xe0   : > { %v862_v33 = vmax.f32 %v3410_v31, %v3412_v32 }
  0xe1   : > { %699 = vmatmul.bf16.gmra.mxu0 %v2984_v36 }
  0xe2   : > { %863 = vmax.xlane.f32.xlu1 %v862_v33  ;;  %788 = vmatmul.bf16.gmra.mxu1 %v2984_v36  ;;  %v3599_v36 = vld [vmem:[#allocation2 + $0x18] sm:$0xff] }
  0xe6   : > { %v3416_v34 = vpop.f32.mrf.mxu0 }
  0xe7   : > { %v3418_v35 = vpop.f32.mrf.mxu1 }
  0xe8   : > { %v865_v37 = vmax.f32 %v3416_v34, %v3418_v35 }
  0xea   : > { %866 = vmax.xlane.f32.xlu1 %v865_v37 }
  0xee   : > { %v3423_v38 = vpop.f32.mrf.mxu0 }
  0xef   : > { %v3425_v39 = vpop.f32.mrf.mxu1 }
  0xf0   : > { %v868_v40 = vmax.f32 %v3423_v38, %v3425_v39 }
  0xf1   : > { %704 = vmatmul.bf16.gmra.mxu0 %v2985_v60 }
  0xf2   : > { %869 = vmax.xlane.f32.xlu2 %v868_v40  ;;  %793 = vmatmul.bf16.gmra.mxu1 %v2985_v60 }
  0xf6   : > { %v3429_v41 = vpop.f32.mrf.mxu0 }
  0xf7   : > { %v3431_v42 = vpop.f32.mrf.mxu1 }
  0xf8   : > { %v871_v43 = vmax.f32 %v3429_v41, %v3431_v42 }
  0xfa   : > { %872 = vmax.xlane.f32.xlu2 %v871_v43 }
  0xfe   : > { %v3435_v44 = vpop.f32.mrf.mxu0 }
  0xff   : > { %v3437_v45 = vpop.f32.mrf.mxu1 }
 0x100   : > { %v874_v46 = vmax.f32 %v3435_v44, %v3437_v45 }
 0x101   : > { %709 = vmatmul.bf16.gmra.mxu0 %v2986_v16 }
 0x102   : > { %875 = vmax.xlane.f32.xlu0 %v874_v46  ;;  %798 = vmatmul.bf16.gmra.mxu1 %v2986_v16 }
 0x106   : > { %v3441_v47 = vpop.f32.mrf.mxu0 }
 0x107   : > { %v3443_v48 = vpop.f32.mrf.mxu1 }
 0x108   : > { %v877_v49 = vmax.f32 %v3441_v47, %v3443_v48 }
 0x10a   : > { %878 = vmax.xlane.f32.xlu1 %v877_v49  ;;  %v828_v49 = vld [vmem:[#allocation2 + $0x20] sm:$0xff] }
 0x10e   : > { %v3447_v50 = vpop.f32.mrf.mxu0 }
 0x10f   : > { %v3449_v51 = vpop.f32.mrf.mxu1 }
 0x110   : > { %v880_v52 = vmax.f32 %v3447_v50, %v3449_v51 }
 0x112   : > { %881 = vmax.xlane.f32.xlu2 %v880_v52 }
 0x116   : > { %v3453_v53 = vpop.f32.mrf.mxu0 }
 0x117   : > { %v3455_v54 = vpop.f32.mrf.mxu1 }
 0x118   : > { %v883_v55 = vmax.f32 %v3453_v53, %v3455_v54 }
 0x11a   : > { %884 = vmax.xlane.f32.xlu0 %v883_v55 }
 0x11e   : > { %v3459_v56 = vpop.f32.mrf.mxu0 }
 0x11f   : > { %v3461_v57 = vpop.f32.mrf.mxu1 }
 0x120   : > { %v886_v59 = vmax.f32 %v3459_v56, %v3461_v57 }
 0x122   : > { %887 = vmax.xlane.f32.xlu1 %v886_v59  ;;  %v3628_v59 = vld [vmem:[#allocation2 + $0x28] sm:$0xff] }
 0x126   : > { %v3474_v61 = vpop.f32.mrf.mxu0 }
 0x127   : > { %v3476_v62 = vpop.f32.mrf.mxu1 }
 0x128   : > { %v889_v63 = vmax.f32 %v3474_v61, %v3476_v62 }
 0x12a   : > { %890 = vmax.xlane.f32.xlu2 %v889_v63 }
 0x12e   : > { %v3488_v0 = vpop.f32.mrf.mxu0 }
 0x12f   : > { %4691 = vst [vmem:[#allocation5_spill] sm:$0xff] %v3488_v0  ;;  %v3490_v1 = vpop.f32.mrf.mxu1 }
 0x130   : > { %4692 = vst [vmem:[#allocation6_spill] sm:$0xff] %v3490_v1  ;;  %v892_v2 = vmax.f32 %v3488_v0, %v3490_v1 }
 0x132   : > { %893 = vmax.xlane.f32.xlu0 %v892_v2  ;;  %v3635_v2 = vld [vmem:[#allocation2 + $0x30] sm:$0xff] }
 0x136   : > { %v3502_v3 = vpop.f32.mrf.mxu0 }
 0x137   : > { %v3504_v4 = vpop.f32.mrf.mxu1 }
 0x138   : > { %4693 = vst [vmem:[#allocation7_spill] sm:$0xff] %v3504_v4  ;;  %v895_v5 = vmax.f32 %v3502_v3, %v3504_v4  ;;  %v2989_v4 = vld [vmem:[%s3387_s22 + $0x70] sm:$0xff] }
 0x13a   : > { %896 = vmax.xlane.f32.xlu1 %v895_v5  ;;  %v2987_v5 = vld [vmem:[%s3387_s22 + $0x60] sm:$0xff] }
 0x13b   : > { %714 = vmatmul.bf16.gmra.mxu0 %v2987_v5  ;;  %803 = vmatmul.bf16.gmra.mxu1 %v2987_v5 }
 0x13e   : > { %v3516_v7 = vpop.f32.mrf.mxu0 }
 0x13f   : > { %4694 = vst [vmem:[#allocation8_spill] sm:$0xff] %v3516_v7  ;;  %v3518_v8 = vpop.f32.mrf.mxu1 }
 0x140   : > { %4695 = vst [vmem:[#allocation9_spill] sm:$0xff] %v3518_v8  ;;  %v898_v10 = vmax.f32 %v3516_v7, %v3518_v8 }
 0x142   : > { %899 = vmax.xlane.f32.xlu2 %v898_v10 }
 0x145   : > { %v858_v12 = vpop.xlane.xlu0 %857 }
 0x146   : > { %v952_v13 = vmax.f32 %v824_v11, %v858_v12  ;;  %v3538_v14 = vpop.f32.mrf.mxu0  ;;  %v3647_v12 = vld [vmem:[#allocation2 + $0x38] sm:$0xff] }
 0x147   : > { %4696 = vst [vmem:[#allocation10_spill] sm:$0xff] %v3538_v14  ;;  %v3540_v15 = vpop.f32.mrf.mxu1 }
 0x148   : > { %4697 = vst [vmem:[#allocation11_spill] sm:$0xff] %v3540_v15  ;;  %v901_v17 = vmax.f32 %v3538_v14, %v3540_v15  ;;  %v984_v37 = vsub.f32 %v824_v11, %v952_v13 }
 0x149   : > { %2283 = vst.msk [vmem:[#allocation2] sm:$0xff] %vm293_vm0, %v952_v13 }
 0x14a   : > { %902 = vmax.xlane.f32.xlu0 %v901_v17  ;;  %v1016_v46 = vmul.f32 1.442695, %v984_v37 }
 0x14c   : > { %3053 = vpow2.f32 %v1016_v46 }
 0x14d   : > { %v861_v19 = vpop.xlane.xlu0 %860 }
 0x14e   : > { %v3563_v20 = vmax.f32 %v3554_v18, %v861_v19  ;;  %v3565_v21 = vpop.f32.mrf.mxu0 }
 0x14f   : > { %4698 = vst [vmem:[#allocation12_spill] sm:$0xff] %v3565_v21  ;;  %v3567_v22 = vpop.f32.mrf.mxu1 }
 0x150   : > { %4699 = vst [vmem:[#allocation13_spill] sm:$0xff] %v3567_v22  ;;  %v904_v23 = vmax.f32 %v3565_v21, %v3567_v22  ;;  %v985_v24 = vsub.f32 %v3554_v18, %v3563_v20 }
 0x151   : > { %2284 = vst.msk [vmem:[#allocation2 + $0x8] sm:$0xff] %vm293_vm0, %v3563_v20 }
 0x152   : > { %905 = vmax.xlane.f32.xlu1 %v904_v23  ;;  %v3625_v58 = vpop.eup %3053 }
 0x153   : > { %4700 = vst [vmem:[#allocation14_spill] sm:$0xff] %v3625_v58 }
 0x155   : > { %v864_v30 = vpop.xlane.xlu1 %863 }
 0x156   : > { %v954_v33 = vmax.f32 %v3581_v27, %v864_v30  ;;  %v3643_v10 = vpop.f32.mrf.mxu0  ;;  %v3660_v30 = vld [vmem:[#allocation2 + $0x40] sm:$0xff] }
 0x157   : > { %4701 = vst [vmem:[#allocation15_spill] sm:$0xff] %v3643_v10  ;;  %v3645_v11 = vpop.f32.mrf.mxu1 }
 0x158   : > { %2285 = vst.msk [vmem:[#allocation2 + $0x10] sm:$0xff] %vm293_vm0, %v954_v33  ;;  %v907_v17 = vmax.f32 %v3643_v10, %v3645_v11  ;;  %v3015_v10 = vld [vmem:[%s3705_s25 + $0x40] sm:$0xff] }
 0x159   : > { %4702 = vst [vmem:[#allocation16_spill] sm:$0xff] %v3645_v11  ;;  %v3018_v11 = vld [vmem:[%s3705_s25 + $0x58] sm:$0xff] }
 0x15a   : > { %1082 = vperm.xlu2 %3050, %v952_v13  }
 0x15d   : > { %v867_v40 = vpop.xlane.xlu1 %866 }
 0x15e   : > { %v3608_v43 = vmax.f32 %v3599_v36, %v867_v40  ;;  %1087 = vperm.xlu0 %3051, %v3563_v20   ;;  %v3658_v23 = vpop.f32.mrf.mxu0 }
 0x15f   : > { %v3656_v19 = vpop.f32.mrf.mxu1  ;;  %4704 = vst [vmem:[#allocation18_spill] sm:$0xff] %v3658_v23 }
 0x160   : > { %2286 = vst.msk [vmem:[#allocation2 + $0x18] sm:$0xff] %vm293_vm0, %v3608_v43  ;;  %v910_v37 = vmax.f32 %v3658_v23, %v3656_v19  ;;  %v987_v23 = vsub.f32 %v3599_v36, %v3608_v43 }
 0x161   : > { %4703 = vst [vmem:[#allocation17_spill] sm:$0xff] %v3656_v19 }
 0x165   : > { %v870_v52 = vpop.xlane.xlu2 %869 }
 0x166   : > { %v3621_v55 = vmax.f32 %v828_v49, %v870_v52  ;;  %v3669_v52 = vld [vmem:[#allocation2 + $0x48] sm:$0xff] }
 0x167   : > { %v3688_v19 = vpop.f32.mrf.mxu1 }
 0x168   : > { %2287 = vst.msk [vmem:[#allocation2 + $0x20] sm:$0xff] %vm293_vm0, %v3621_v55 }
 0x169   : > { %4706 = vst [vmem:[#allocation20_spill] sm:$0xff] %v3688_v19 }
 0x16b   : > { %1691 = vperm.xlu1 %3052, %v3625_v58  }
 0x16d   : > { %v873_v60 = vpop.xlane.xlu2 %872 }
 0x16e   : > { %v3631_v63 = vmax.f32 %v3628_v59, %v873_v60  ;;  %v986_v60 = vsub.f32 %v3581_v27, %v954_v33 }
 0x16f   : > { %v3765_v15 = vpop.f32.mrf.mxu1 }
 0x170   : > { %2288 = vst.msk [vmem:[#allocation2 + $0x28] sm:$0xff] %vm293_vm0, %v3631_v63 }
 0x171   : > { %4712 = vst [vmem:[#allocation26_spill] sm:$0xff] %v3765_v15 }
 0x173   : > { %1092 = vperm.xlu1 %3052, %v954_v33  }
 0x175   : > { %v876_v6 = vpop.xlane.xlu0 %875 }
 0x176   : > { %v3639_v9 = vmax.f32 %v3635_v2, %v876_v6 }
 0x178   : > { %2289 = vst.msk [vmem:[#allocation2 + $0x30] sm:$0xff] %vm293_vm0, %v3639_v9 }
 0x17d   : > { %v879_v13 = vpop.xlane.xlu1 %878 }
 0x17e   : > { %v3650_v16 = vmax.f32 %v3647_v12, %v879_v13  ;;  %v1018_v13 = vmul.f32 1.442695, %v985_v24 }
 0x180   : > { %2290 = vst.msk [vmem:[#allocation2 + $0x38] sm:$0xff] %vm293_vm0, %v3650_v16  ;;  %3055 = vpow2.f32 %v1018_v13 }
 0x183   : > { %908 = vmax.xlane.f32.xlu2 %v907_v17  ;;  %v1020_v17 = vmul.f32 1.442695, %v986_v60  ;;  %v3697_v60 = vld [vmem:[#allocation2 + $0x58] sm:$0xff] }
 0x185   : > { %v882_v40 = vpop.xlane.xlu2 %881  ;;  %3057 = vpow2.f32 %v1020_v17 }
 0x186   : > { %v3665_v46 = vmax.f32 %v3660_v30, %v882_v40  ;;  %v3680_v40 = vld [vmem:[#allocation2 + $0x50] sm:$0xff]  ;;  %v3692_v20 = vpop.eup %3055 }
 0x187   : > { %4707 = vst [vmem:[#allocation21_spill] sm:$0xff] %v3692_v20 }
 0x188   : > { %2291 = vst.msk [vmem:[#allocation2 + $0x40] sm:$0xff] %vm293_vm0, %v3665_v46  ;;  %911 = vmax.xlane.f32.xlu0 %v910_v37  ;;  %v988_v37 = vsub.f32 %v828_v49, %v3621_v55 }
 0x18a   : > { %v1024_v18 = vmul.f32 1.442695, %v988_v37  ;;  %v3014_v37 = vld [vmem:[%s3705_s25 + $0x38] sm:$0xff] }
 0x18b   : > { %v3694_v24 = vpop.eup %3057  ;;  %2041 = vmatpush.bf16.msra.mxu2 %v3014_v37  ;;  %v3012_v37 = vld [vmem:[%s3705_s25 + $0x28] sm:$0xff] }
 0x18c   : > { %4708 = vst [vmem:[#allocation22_spill] sm:$0xff] %v3694_v24  ;;  %3059 = vpow2.f32 %v1024_v18  ;;  %v3720_v18 = vld [vmem:[#allocation2 + $0x60] sm:$0xff] }
 0x18d   : > { %v885_v5 = vpop.xlane.xlu0 %884 }
 0x18e   : > { %v3673_v6 = vmax.f32 %v3669_v52, %v885_v5  ;;  %v3686_v5 = vpop.f32.mrf.mxu0 }
 0x18f   : > { %4705 = vst [vmem:[#allocation19_spill] sm:$0xff] %v3686_v5  ;;  %v913_v49 = vmax.f32 %v3686_v5, %v3688_v19  ;;  %v3013_v19 = vld [vmem:[%s3705_s25 + $0x30] sm:$0xff] }
 0x190   : > { %2292 = vst.msk [vmem:[#allocation2 + $0x48] sm:$0xff] %vm293_vm0, %v3673_v6  ;;  %v3021_v5 = vld [vmem:[%s3705_s25 + $0x70] sm:$0xff]  ;;  %2042 = vmatpush.bf16.msra.mxu2 %v3013_v19  ;;  %v3019_v19 = vld [vmem:[%s3705_s25 + $0x60] sm:$0xff] }
 0x194   : > { %2043 = vmatpush.bf16.msra.mxu2 %v3012_v37  ;;  %v3017_v37 = vld [vmem:[%s3705_s25 + $0x50] sm:$0xff] }
 0x195   : > { %v888_v27 = vpop.xlane.xlu1 %887 }
 0x196   : > { %v3684_v33 = vmax.f32 %v3680_v40, %v888_v27  ;;  %v3022_v27 = vld [vmem:[%s3705_s25 + $0x78] sm:$0xff] }
 0x197   : > { %2130 = vmatpush.bf16.msra.mxu3 %v3022_v27  ;;  %v3020_v27 = vld [vmem:[%s3705_s25 + $0x68] sm:$0xff] }
 0x198   : > { %2293 = vst.msk [vmem:[#allocation2 + $0x50] sm:$0xff] %vm293_vm0, %v3684_v33 }
 0x19b   : > { %1696 = vperm.xlu2 %3050, %v3692_v20   ;;  %2131 = vmatpush.bf16.msra.mxu3 %v3021_v5  ;;  %v3011_v20 = vld [vmem:[%s3705_s25 + $0x20] sm:$0xff]  ;;  %v1022_v5 = vmul.f32 1.442695, %v987_v23  ;;  %v2988_v23 = vld [vmem:[%s3387_s22 + $0x68] sm:$0xff] }
 0x19c   : > { %1701 = vperm.xlu0 %3051, %v3694_v24   ;;  %v3717_v24 = vpop.eup %3059  ;;  %2044 = vmatpush.bf16.msra.mxu2 %v3011_v20  ;;  %v3747_v20 = vld [vmem:[#allocation2 + $0x70] sm:$0xff] }
 0x19d   : > { %v891_v13 = vpop.xlane.xlu2 %890  ;;  %914 = vmax.xlane.f32.xlu1 %v913_v49  ;;  %4709 = vst [vmem:[#allocation23_spill] sm:$0xff] %v3717_v24  ;;  %3061 = vpow2.f32 %v1022_v5  ;;  %719 = vmatmul.bf16.gmra.mxu0 %v2988_v23  ;;  %v3016_v5 = vld [vmem:[%s3705_s25 + $0x48] sm:$0xff] }
 0x19e   : > { %v3709_v17 = vmax.f32 %v3697_v60, %v891_v13  ;;  %808 = vmatmul.bf16.gmra.mxu1 %v2988_v23  ;;  %v3761_v23 = vld [vmem:[#allocation2 + $0x78] sm:$0xff] }
 0x19f   : > { %2132 = vmatpush.bf16.msra.mxu3 %v3020_v27  ;;  %4711 = vst [vmem:[#allocation25_spill] sm:$0xff] %v3761_v23 }
 0x1a0   : > { %2294 = vst.msk [vmem:[#allocation2 + $0x58] sm:$0xff] %vm293_vm0, %v3709_v17 }
 0x1a3   : > { %1097 = vperm.xlu2 %3050, %v3608_v43   ;;  %2133 = vmatpush.bf16.msra.mxu3 %v3019_v19  ;;  %v3010_v43 = vld [vmem:[%s3705_s25 + $0x18] sm:$0xff] }
 0x1a4   : > { %1711 = vperm.xlu0 %3051, %v3717_v24   ;;  %2045 = vmatpush.bf16.msra.mxu2 %v3010_v43  ;;  %v3007_v43 = vld [vmem:[%s3705_s25] sm:$0xff] }
 0x1a5   : > { %v894_v49 = vpop.xlane.xlu0 %893 }
 0x1a6   : > { %v3724_v13 = vmax.f32 %v3720_v18, %v894_v49  ;;  %v3735_v49 = vld [vmem:[#allocation2 + $0x68] sm:$0xff] }
 0x1a7   : > { %2134 = vmatpush.bf16.msra.mxu3 %v3018_v11  ;;  %v3008_v11 = vld [vmem:[%s3705_s25 + $0x8] sm:$0xff] }
 0x1a8   : > { %2295 = vst.msk [vmem:[#allocation2 + $0x60] sm:$0xff] %vm293_vm0, %v3724_v13 }
 0x1ab   : > { %1102 = vperm.xlu2 %3050, %v3621_v55   ;;  %v3009_v55 = vld [vmem:[%s3705_s25 + $0x10] sm:$0xff]  ;;  %2135 = vmatpush.bf16.msra.mxu3 %v3017_v37 }
 0x1ac   : > { %2046 = vmatpush.bf16.msra.mxu2 %v3009_v55  ;;  %v3763_v55 = vpop.f32.mrf.mxu0 }
 0x1ad   : > { %v897_v24 = vpop.xlane.xlu1 %896  ;;  %724 = vmatmul.bf16.gmra.mxu0 %v2989_v4 }
 0x1ae   : > { %v3738_v36 = vmax.f32 %v3735_v49, %v897_v24  ;;  %v3749_v24 = vpop.eup %3061  ;;  %813 = vmatmul.bf16.gmra.mxu1 %v2989_v4 }
 0x1af   : > { %4710 = vst [vmem:[#allocation24_spill] sm:$0xff] %v3749_v24  ;;  %2136 = vmatpush.bf16.msra.mxu3 %v3016_v5 }
 0x1b0   : > { %2296 = vst.msk [vmem:[#allocation2 + $0x68] sm:$0xff] %vm293_vm0, %v3738_v36  ;;  %2047 = vmatpush.bf16.msra.mxu2 %v3008_v11 }
 0x1b3   : > { %2137 = vmatpush.bf16.msra.mxu3 %v3015_v10 }
 0x1b4   : > { %2048 = vmatpush.bf16.msra.mxu2 %v3007_v43  ;;  %v3775_v43 = vld [vmem:[#allocation2 + $0x80] sm:$0xff] }
 0x1b5   : > { %v900_v27 = vpop.xlane.xlu2 %899 }
 0x1b6   : > { %v3752_v19 = vmax.f32 %v3747_v20, %v900_v27  ;;  %1706 = vperm.xlu1 %3052, %v3749_v24  }
 0x1b8   : > { %2297 = vst.msk [vmem:[#allocation2 + $0x70] sm:$0xff] %vm293_vm0, %v3752_v19 }
 0x1bd   : > { %v1083_v37 = vpop.permute.xlu2 %1082  ;;  %v903_v27 = vpop.xlane.xlu0 %902 }
 0x1be   : > { %v1240_v24 = vsub.f32 %v3398_v25, %v1083_v37  ;;  %v1241_v14 = vsub.f32 %v3400_v26, %v1083_v37  ;;  %v3770_v8 = vmax.f32 %v3761_v23, %v903_v27  ;;  %1107 = vperm.xlu1 %3052, %v3631_v63   ;;  %v3781_v25 = vpop.f32.mrf.mxu0  ;;  %v3783_v26 = vpop.f32.mrf.mxu1 }
 0x1bf   : > { %4713 = vst [vmem:[#allocation27_spill] sm:$0xff] %v3781_v25 }
 0x1c0   : > { %v1304_v11 = vmul.f32 1.442695, %v1240_v24  ;;  %v1306_v5 = vmul.f32 1.442695, %v1241_v14  ;;  %2298 = vst.msk [vmem:[#allocation2 + $0x78] sm:$0xff] %vm293_vm0, %v3770_v8  ;;  %v919_v24 = vmax.f32 %v3781_v25, %v3783_v26 }
 0x1c1   : > { %4714 = vst [vmem:[#allocation28_spill] sm:$0xff] %v3783_v26  ;;  %v991_v26 = vsub.f32 %v3647_v12, %v3650_v16 }
 0x1c2   : > { %3063 = vpow2.f32 %v1304_v11  ;;  %v916_v11 = vmax.f32 %v3763_v55, %v3765_v15 }
 0x1c3   : > { %3065 = vpow2.f32 %v1306_v5 }
 0x1c5   : > { %v906_v7 = vpop.xlane.xlu1 %905 }
 0x1c6   : > { %v3778_v10 = vmax.f32 %v3775_v43, %v906_v7  ;;  %1117 = vperm.xlu1 %3052, %v3650_v16   ;;  %v3810_v4 = vpop.f32.mrf.mxu1 }
 0x1c7   : > { %4715 = vst [vmem:[#allocation29_spill] sm:$0xff] %v3810_v4 }
 0x1c8   : > { %v3064_v37 = vpop.eup %3063  ;;  %2299 = vst.msk [vmem:[#allocation2 + $0x80] sm:$0xff] %vm293_vm0, %v3778_v10 }
 0x1c9   : > { %v3066_v14 = vpop.eup %3065 }
 0x1ca   : > { %v3789_v27 = vadd.f32 %v3066_v14, %v3064_v37 }
 0x1ce   : > { %920 = vmax.xlane.f32.xlu0 %v919_v24 }
 0x1d0   : > { %v1088_v7 = vpop.permute.xlu0 %1087 }
 0x1d1   : > { %v1242_v5 = vsub.f32 %v3404_v28, %v1088_v7  ;;  %v1243_v58 = vsub.f32 %v3406_v29, %v1088_v7  ;;  %v1030_v28 = vmul.f32 1.442695, %v991_v26  ;;  %v989_v29 = vsub.f32 %v3628_v59, %v3631_v63 }
 0x1d3   : > { %v1308_v22 = vmul.f32 1.442695, %v1242_v5  ;;  %v1310_v21 = vmul.f32 1.442695, %v1243_v58  ;;  %v990_v5 = vsub.f32 %v3635_v2, %v3639_v9 }
 0x1d4   : > { %917 = vmax.xlane.f32.xlu2 %v916_v11  ;;  %v3829_v11 = vld [vmem:[#allocation2 + $0x90] sm:$0xff] }
 0x1d5   : > { %3067 = vpow2.f32 %v1308_v22 }
 0x1d6   : > { %3069 = vpow2.f32 %v1310_v21 }
 0x1d7   : > { %3071 = vpow2.f32 %v1030_v28 }
 0x1db   : > { %v3068_v1 = vpop.eup %3067 }
 0x1dc   : > { %v3070_v25 = vpop.eup %3069  ;;  %v1881_v24 = vpack.c.bf16 %v3068_v1, %v3064_v37  ;;  %v3822_v37 = vld [vmem:[#allocation2 + $0x88] sm:$0xff] }
 0x1dd   : > { %v3797_v0 = vpop.permute.xlu1 %1691  ;;  %v1882_v23 = vpack.c.bf16 %v3070_v25, %v3066_v14  ;;  %v3800_v15 = vadd.f32 %v3070_v25, %v3068_v1  ;;  %v3807_v1 = vpop.eup %3071  ;;  %v1026_v25 = vmul.f32 1.442695, %v989_v29  ;;  %v2990_v29 = vld [vmem:[%s3387_s22 + $0x78] sm:$0xff] }
 0x1de   : > { %2049 = vmatmul.bf16.vlgmr.msra.gmra.mxu2 %v1881_v24  ;;  %729 = vmatmul.bf16.gmra.mxu0 %v2990_v29 }
 0x1df   : > { %2138 = vmatmul.bf16.vlgmr.msra.gmra.mxu3 %v1882_v23  ;;  %v3812_v23 = vpop.f32.mrf.mxu0  ;;  %818 = vmatmul.bf16.gmra.mxu1 %v2990_v29 }
 0x1e2   : > { %1122 = vperm.xlu0 %3051, %v3665_v46  }
 0x1e5   : > { %v1093_v21 = vpop.permute.xlu1 %1092 }
 0x1e6   : > { %v1244_v22 = vsub.f32 %v3410_v31, %v1093_v21  ;;  %v1245_v58 = vsub.f32 %v3412_v32, %v1093_v21  ;;  %v922_v31 = vmax.f32 %v3812_v23, %v3810_v4  ;;  %v1028_v21 = vmul.f32 1.442695, %v990_v5 }
 0x1e8   : > { %v1312_v12 = vmul.f32 1.442695, %v1244_v22  ;;  %v1314_v16 = vmul.f32 1.442695, %v1245_v58  ;;  %v3841_v58 = vpop.f32.mrf.mxu0 }
 0x1ea   : > { %3073 = vpow2.f32 %v1312_v12  ;;  %1726 = vperm.xlu0 %3051, %v3807_v1   ;;  %v3843_v12 = vpop.f32.mrf.mxu1 }
 0x1eb   : > { %3075 = vpow2.f32 %v1314_v16 }
 0x1ec   : > { %1112 = vperm.xlu2 %3050, %v3639_v9   ;;  %3077 = vpow2.f32 %v1026_v25 }
 0x1ed   : > { %3079 = vpow2.f32 %v1028_v21  ;;  %v3854_v21 = vld [vmem:[#allocation2 + $0x98] sm:$0xff] }
 0x1f0   : > { %v3074_v32 = vpop.eup %3073  ;;  %923 = vmax.xlane.f32.xlu1 %v922_v31 }
 0x1f1   : > { %v3076_v59 = vpop.eup %3075 }
 0x1f2   : > { %v3817_v63 = vadd.f32 %v3076_v59, %v3074_v32  ;;  %v3819_v26 = vpop.eup %3077  ;;  %v3850_v5 = vpop.f32.mrf.mxu1 }
 0x1f3   : > { %v3847_v25 = vpop.eup %3079  ;;  %4718 = vst [vmem:[#allocation32_spill] sm:$0xff] %v3850_v5 }
 0x1f4   : > { %1716 = vperm.xlu2 %3050, %v3819_v26   ;;  %4717 = vst [vmem:[#allocation31_spill] sm:$0xff] %v3847_v25 }
 0x1f6   : > { %v909_v14 = vpop.xlane.xlu2 %908 }
 0x1f7   : > { %v3825_v7 = vmax.f32 %v3822_v37, %v909_v14 }
 0x1f9   : > { %2300 = vst.msk [vmem:[#allocation2 + $0x88] sm:$0xff] %vm293_vm0, %v3825_v7 }
 0x1fb   : > { %v912_v24 = vpop.xlane.xlu0 %911 }
 0x1fc   : > { %v3834_v28 = vmax.f32 %v3829_v11, %v912_v24  ;;  %v3852_v24 = vpop.f32.mrf.mxu0 }
 0x1fd   : > { %4719 = vst [vmem:[#allocation33_spill] sm:$0xff] %v3852_v24 }
 0x1fe   : > { %v3837_v22 = vpop.permute.xlu2 %1696  ;;  %2301 = vst.msk [vmem:[#allocation2 + $0x90] sm:$0xff] %vm293_vm0, %v3834_v28 }
 0x1ff   : > { %4716 = vst [vmem:[#allocation30_spill] sm:$0xff] %v3837_v22 }
 0x206   : > { %v1098_v16 = vpop.permute.xlu2 %1097 }
 0x207   : > { %v1246_v2 = vsub.f32 %v3416_v34, %v1098_v16  ;;  %v1247_v9 = vsub.f32 %v3418_v35, %v1098_v16  ;;  %v928_v16 = vmax.f32 %v3852_v24, %v3850_v5 }
 0x209   : > { %v1316_v31 = vmul.f32 1.442695, %v1246_v2  ;;  %v1318_v14 = vmul.f32 1.442695, %v1247_v9  ;;  %1721 = vperm.xlu1 %3052, %v3847_v25  }
 0x20b   : > { %3081 = vpow2.f32 %v1316_v31 }
 0x20c   : > { %3083 = vpow2.f32 %v1318_v14 }
 0x20e   : > { %v1103_v29 = vpop.permute.xlu2 %1102 }
 0x20f   : > { %v1248_v22 = vsub.f32 %v3423_v38, %v1103_v29  ;;  %v1249_v34 = vsub.f32 %v3425_v39, %v1103_v29 }
 0x210   : > { %v915_v35 = vpop.xlane.xlu1 %914 }
 0x211   : > { %v3082_v2 = vpop.eup %3081  ;;  %v1320_v9 = vmul.f32 1.442695, %v1248_v22  ;;  %v1322_v25 = vmul.f32 1.442695, %v1249_v34  ;;  %v3861_v31 = vmax.f32 %v3854_v21, %v915_v35  ;;  %1132 = vperm.xlu1 %3052, %v3684_v33   ;;  %v925_v34 = vmax.f32 %v3841_v58, %v3843_v12 }
 0x212   : > { %v3084_v14 = vpop.eup %3083  ;;  %v1883_v4 = vpack.c.bf16 %v3082_v2, %v3074_v32  ;;  %v994_v32 = vsub.f32 %v3680_v40, %v3684_v33 }
 0x213   : > { %3085 = vpow2.f32 %v1320_v9  ;;  %2302 = vst.msk [vmem:[#allocation2 + $0x98] sm:$0xff] %vm293_vm0, %v3861_v31  ;;  %v1884_v38 = vpack.c.bf16 %v3084_v14, %v3076_v59  ;;  %v3866_v39 = vadd.f32 %v3084_v14, %v3082_v2 }
 0x214   : > { %3087 = vpow2.f32 %v1322_v25  ;;  %2054 = vmatmul.bf16.gmra.mxu2 %v1883_v4  ;;  %929 = vmax.xlane.f32.xlu0 %v928_v16  ;;  %v1036_v9 = vmul.f32 1.442695, %v994_v32  ;;  %v992_v4 = vsub.f32 %v3660_v30, %v3665_v46  ;;  %v3881_v25 = vpop.permute.xlu0 %1701  ;;  %v3889_v30 = vpop.f32.mrf.mxu0 }
 0x215   : > { %2143 = vmatmul.bf16.gmra.mxu3 %v1884_v38  ;;  %4721 = vst [vmem:[#allocation35_spill] sm:$0xff] %v3881_v25 }
 0x216   : > { %3089 = vpow2.f32 %v1036_v9  ;;  %v1032_v16 = vmul.f32 1.442695, %v992_v4  ;;  %4723 = vst [vmem:[#allocation37_spill] sm:$0xff] %v3889_v30 }
 0x218   : > { %3091 = vpow2.f32 %v1032_v16 }
 0x219   : > { %v3086_v22 = vpop.eup %3085 }
 0x21a   : > { %v3088_v29 = vpop.eup %3087 }
 0x21b   : > { %v3870_v35 = vadd.f32 %v3088_v29, %v3086_v22 }
 0x21c   : > { %v3879_v59 = vpop.eup %3089  ;;  %v3891_v32 = vpop.permute.xlu0 %1711 }
 0x21d   : > { %926 = vmax.xlane.f32.xlu2 %v925_v34  ;;  %v3887_v34 = vpop.f32.mrf.mxu1 }
 0x21e   : > { %4722 = vst [vmem:[#allocation36_spill] sm:$0xff] %v3887_v34  ;;  %v3897_v4 = vpop.eup %3091 }
 0x21f   : > { %4724 = vst [vmem:[#allocation38_spill] sm:$0xff] %v3897_v4 }
 0x228   : > { %v3874_v5 = vpop.permute.xlu1 %1706  ;;  %1137 = vperm.xlu0 %3051, %v3709_v17  }
 0x229   : > { %4720 = vst [vmem:[#allocation34_spill] sm:$0xff] %v3874_v5 }
 0x230   : > { %v1108_v2 = vpop.permute.xlu1 %1107  ;;  %1741 = vperm.xlu0 %3051, %v3879_v59  }
 0x231   : > { %v1250_v14 = vsub.f32 %v3429_v41, %v1108_v2  ;;  %v1251_v40 = vsub.f32 %v3431_v42, %v1108_v2  ;;  %v931_v42 = vmax.f32 %v3889_v30, %v3887_v34 }
 0x233   : > { %v1324_v33 = vmul.f32 1.442695, %v1250_v14  ;;  %v1326_v38 = vmul.f32 1.442695, %v1251_v40 }
 0x235   : > { %3093 = vpow2.f32 %v1324_v33  ;;  %1127 = vperm.xlu2 %3050, %v3673_v6  }
 0x236   : > { %3095 = vpow2.f32 %v1326_v38 }
 0x238   : > { %v1118_v46 = vpop.permute.xlu1 %1117 }
 0x239   : > { %v1254_v9 = vsub.f32 %v3441_v47, %v1118_v46  ;;  %v1255_v41 = vsub.f32 %v3443_v48, %v1118_v46  ;;  %v3902_v47 = vld [vmem:[#allocation2 + $0xa8] sm:$0xff] }
 0x23b   : > { %v3094_v16 = vpop.eup %3093  ;;  %v1332_v2 = vmul.f32 1.442695, %v1254_v9  ;;  %v1334_v14 = vmul.f32 1.442695, %v1255_v41  ;;  %932 = vmax.xlane.f32.xlu1 %v931_v42 }
 0x23c   : > { %v3096_v40 = vpop.eup %3095  ;;  %v1885_v33 = vpack.c.bf16 %v3094_v16, %v3086_v22  ;;  %v993_v22 = vsub.f32 %v3669_v52, %v3673_v6 }
 0x23d   : > { %3097 = vpow2.f32 %v1332_v2  ;;  %1731 = vperm.xlu2 %3050, %v3897_v4   ;;  %v1886_v38 = vpack.c.bf16 %v3096_v40, %v3088_v29  ;;  %v3900_v5 = vadd.f32 %v3096_v40, %v3094_v16  ;;  %v3911_v29 = vld [vmem:[#allocation2 + $0xa0] sm:$0xff]  ;;  %v3918_v40 = vpop.f32.mrf.mxu1 }
 0x23e   : > { %3099 = vpow2.f32 %v1334_v14  ;;  %2059 = vmatmul.bf16.gmra.mxu2 %v1885_v33  ;;  %v1034_v14 = vmul.f32 1.442695, %v993_v22  ;;  %4725 = vst [vmem:[#allocation39_spill] sm:$0xff] %v3918_v40  ;;  %v3920_v33 = vpop.f32.mrf.mxu0 }
 0x23f   : > { %2148 = vmatmul.bf16.gmra.mxu3 %v1886_v38  ;;  %4726 = vst [vmem:[#allocation40_spill] sm:$0xff] %v3920_v33 }
 0x240   : > { %3101 = vpow2.f32 %v1034_v14 }
 0x241   : > { %v921_v48 = vpop.xlane.xlu0 %920 }
 0x242   : > { %v3905_v46 = vmax.f32 %v3902_v47, %v921_v48 }
 0x243   : > { %v3098_v9 = vpop.eup %3097 }
 0x244   : > { %v3100_v41 = vpop.eup %3099  ;;  %2304 = vst.msk [vmem:[#allocation2 + $0xa8] sm:$0xff] %vm293_vm0, %v3905_v46 }
 0x245   : > { %v3913_v42 = vadd.f32 %v3100_v41, %v3098_v9 }
 0x246   : > { %v3926_v34 = vpop.eup %3101  ;;  %v3930_v22 = vpop.f32.mrf.mxu0 }
 0x247   : > { %v918_v16 = vpop.xlane.xlu2 %917  ;;  %4727 = vst [vmem:[#allocation41_spill] sm:$0xff] %v3926_v34 }
 0x248   : > { %v3916_v2 = vmax.f32 %v3911_v29, %v918_v16  ;;  %v3928_v16 = vpop.f32.mrf.mxu1  ;;  %4729 = vst [vmem:[#allocation43_spill] sm:$0xff] %v3930_v22 }
 0x249   : > { %4728 = vst [vmem:[#allocation42_spill] sm:$0xff] %v3928_v16  ;;  %v937_v14 = vmax.f32 %v3930_v22, %v3928_v16  ;;  %v1849_v16 = vmul.f32 0.0, %v3797_v0 }
 0x24a   : > { %2303 = vst.msk [vmem:[#allocation2 + $0xa0] sm:$0xff] %vm293_vm0, %v3916_v2 }
 0x24f   : > { %v1113_v38 = vpop.permute.xlu2 %1112 }
 0x250   : > { %v1252_v52 = vsub.f32 %v3435_v44, %v1113_v38  ;;  %v1253_v6 = vsub.f32 %v3437_v45, %v1113_v38 }
 0x252   : > { %v1328_v48 = vmul.f32 1.442695, %v1252_v52  ;;  %v1330_v25 = vmul.f32 1.442695, %v1253_v6  ;;  %v3938_v6 = vld [vmem:[#allocation2 + $0xb0] sm:$0xff] }
 0x254   : > { %3103 = vpow2.f32 %v1328_v48  ;;  %1736 = vperm.xlu1 %3052, %v3926_v34   ;;  %v1123_v0 = vpop.permute.xlu0 %1122 }
 0x255   : > { %3105 = vpow2.f32 %v1330_v25  ;;  %v934_v25 = vmax.f32 %v3920_v33, %v3918_v40 }
 0x25a   : > { %v3104_v30 = vpop.eup %3103  ;;  %938 = vmax.xlane.f32.xlu0 %v937_v14 }
 0x25b   : > { %v3106_v44 = vpop.eup %3105  ;;  %v1887_v4 = vpack.c.bf16 %v3098_v9, %v3104_v30 }
 0x25c   : > { %1147 = vperm.xlu1 %3052, %v3738_v36   ;;  %v1888_v45 = vpack.c.bf16 %v3100_v41, %v3106_v44  ;;  %v3936_v38 = vadd.f32 %v3106_v44, %v3104_v30  ;;  %v997_v30 = vsub.f32 %v3735_v49, %v3738_v36  ;;  %v3963_v49 = vpop.f32.mrf.mxu1  ;;  %v3965_v36 = vpop.f32.mrf.mxu0 }
 0x25d   : > { %2064 = vmatmul.bf16.gmra.mxu2 %v1887_v4  ;;  %4733 = vst [vmem:[#allocation47_spill] sm:$0xff] %v3963_v49 }
 0x25e   : > { %2153 = vmatmul.bf16.gmra.mxu3 %v1888_v45  ;;  %v1042_v4 = vmul.f32 1.442695, %v997_v30  ;;  %v3961_v45 = vpop.permute.xlu0 %1726  ;;  %4734 = vst [vmem:[#allocation48_spill] sm:$0xff] %v3965_v36 }
 0x25f   : > { %4732 = vst [vmem:[#allocation46_spill] sm:$0xff] %v3961_v45 }
 0x260   : > { %3107 = vpow2.f32 %v1042_v4 }
 0x261   : > { %v2050_v52 = vpop.f32.mrf.mxu2 }
 0x262   : > { %v2139_v48 = vpop.f32.mrf.mxu3 }
 0x263   : > { %v2140_v22 = vadd.f32 %v2139_v48, %v2050_v52  ;;  %v924_v14 = vpop.xlane.xlu1 %923  ;;  %v940_v52 = vmax.f32 %v3965_v36, %v3963_v49 }
 0x264   : > { %v3944_v9 = vmax.f32 %v3938_v6, %v924_v14  ;;  %v3973_v14 = vld [vmem:[#allocation2 + $0xc0] sm:$0xff] }
 0x265   : > { %v3946_v34 = vadd.f32 %v2140_v22, %v1849_v16  ;;  %v995_v16 = vsub.f32 %v3697_v60, %v3709_v17 }
 0x266   : > { %2305 = vst.msk [vmem:[#allocation2 + $0xb0] sm:$0xff] %vm293_vm0, %v3944_v9  ;;  %935 = vmax.xlane.f32.xlu2 %v934_v25  ;;  %v3953_v41 = vpop.eup %3107 }
 0x267   : > { %4730 = vst [vmem:[#allocation44_spill] sm:$0xff] %v3946_v34  ;;  %v1038_v22 = vmul.f32 1.442695, %v995_v16  ;;  %v1256_v34 = vsub.f32 %v3447_v50, %v1123_v0 }
 0x268   : > { %4731 = vst [vmem:[#allocation45_spill] sm:$0xff] %v3953_v41 }
 0x269   : > { %3109 = vpow2.f32 %v1038_v22  ;;  %v3976_v22 = vpop.permute.xlu2 %1716 }
 0x26a   : > { %4736 = vst [vmem:[#allocation50_spill] sm:$0xff] %v3976_v22 }
 0x26e   : > { %1152 = vperm.xlu0 %3051, %v3752_v19  }
 0x26f   : > { %v3971_v17 = vpop.eup %3109 }
 0x270   : > { %4735 = vst [vmem:[#allocation49_spill] sm:$0xff] %v3971_v17 }
 0x276   : > { %1756 = vperm.xlu0 %3051, %v3953_v41  }
 0x27b   : > { %v3958_v44 = vpop.permute.xlu1 %1721 }
 0x27e   : > { %1142 = vperm.xlu2 %3050, %v3724_v13  }
 0x283   : > { %v1133_v48 = vpop.permute.xlu1 %1132 }
 0x284   : > { %v1260_v25 = vsub.f32 %v3459_v56, %v1133_v48  ;;  %v1261_v60 = vsub.f32 %v3461_v57, %v1133_v48  ;;  %v3985_v57 = vld [vmem:[#allocation2 + $0xb8] sm:$0xff] }
 0x286   : > { %v1344_v30 = vmul.f32 1.442695, %v1260_v25  ;;  %v1346_v4 = vmul.f32 1.442695, %v1261_v60  ;;  %1746 = vperm.xlu2 %3050, %v3971_v17   ;;  %941 = vmax.xlane.f32.xlu1 %v940_v52  ;;  %v996_v52 = vsub.f32 %v3720_v18, %v3724_v13  ;;  %v1257_v18 = vsub.f32 %v3449_v51, %v1123_v0 }
 0x287   : > { %v930_v16 = vpop.xlane.xlu0 %929  ;;  %v1336_v13 = vmul.f32 1.442695, %v1256_v34 }
 0x288   : > { %3111 = vpow2.f32 %v1344_v30  ;;  %v3979_v45 = vmax.f32 %v3973_v14, %v930_v16  ;;  %v3995_v30 = vpop.f32.mrf.mxu1  ;;  %v1040_v22 = vmul.f32 1.442695, %v996_v52  ;;  %v1338_v49 = vmul.f32 1.442695, %v1257_v18 }
 0x289   : > { %3113 = vpow2.f32 %v1346_v4  ;;  %4737 = vst [vmem:[#allocation51_spill] sm:$0xff] %v3995_v30  ;;  %v3997_v4 = vpop.f32.mrf.mxu0 }
 0x28a   : > { %2307 = vst.msk [vmem:[#allocation2 + $0xc0] sm:$0xff] %vm293_vm0, %v3979_v45  ;;  %3115 = vpow2.f32 %v1040_v22 }
 0x28b   : > { %4738 = vst [vmem:[#allocation52_spill] sm:$0xff] %v3997_v4  ;;  %3117 = vpow2.f32 %v1336_v13 }
 0x28c   : > { %3119 = vpow2.f32 %v1338_v49 }
 0x28e   : > { %v3983_v56 = vpop.eup %3111 }
 0x28f   : > { %v3987_v48 = vpop.eup %3113 }
 0x290   : > { %v927_v25 = vpop.xlane.xlu2 %926  ;;  %v3993_v60 = vadd.f32 %v3987_v48, %v3983_v56 }
 0x291   : > { %v4000_v16 = vmax.f32 %v3985_v57, %v927_v25  ;;  %v4008_v33 = vpop.f32.mrf.mxu0  ;;  %v4010_v25 = vpop.f32.mrf.mxu1 }
 0x292   : > { %4739 = vst [vmem:[#allocation53_spill] sm:$0xff] %v4008_v33  ;;  %v946_v34 = vmax.f32 %v4008_v33, %v4010_v25  ;;  %v4758_v33 = vld [vmem:[#allocation5_spill] sm:$0xff] }
 0x293   : > { %2306 = vst.msk [vmem:[#allocation2 + $0xb8] sm:$0xff] %vm293_vm0, %v4000_v16 }
 0x294   : > { %4740 = vst [vmem:[#allocation54_spill] sm:$0xff] %v4010_v25 }
 0x298   : > { %v1128_v36 = vpop.permute.xlu2 %1127 }
 0x299   : > { %v1258_v17 = vsub.f32 %v3453_v53, %v1128_v36  ;;  %v1259_v40 = vsub.f32 %v3455_v54, %v1128_v36  ;;  %v4016_v54 = vpop.eup %3115 }
 0x29a   : > { %v1138_v50 = vpop.permute.xlu0 %1137  ;;  %4741 = vst [vmem:[#allocation55_spill] sm:$0xff] %v4016_v54  ;;  %v4019_v36 = vpop.eup %3117 }
 0x29b   : > { %v1340_v41 = vmul.f32 1.442695, %v1258_v17  ;;  %v1342_v24 = vmul.f32 1.442695, %v1259_v40  ;;  %v1262_v52 = vsub.f32 %v3474_v61, %v1138_v50  ;;  %v1263_v51 = vsub.f32 %v3476_v62, %v1138_v50  ;;  %v4021_v61 = vpop.eup %3119  ;;  %v4032_v50 = vpop.f32.mrf.mxu3 }
 0x29c   : > { %4743 = vst [vmem:[#allocation57_spill] sm:$0xff] %v4032_v50 }
 0x29d   : > { %3121 = vpow2.f32 %v1340_v41  ;;  %v1348_v53 = vmul.f32 1.442695, %v1262_v52  ;;  %v1350_v0 = vmul.f32 1.442695, %v1263_v51  ;;  %v4035_v52 = vld [vmem:[#allocation2 + $0xc8] sm:$0xff]  ;;  %v943_v51 = vmax.f32 %v3997_v4, %v3995_v30 }
 0x29e   : > { %3123 = vpow2.f32 %v1342_v24  ;;  %v4027_v24 = vpop.f32.mrf.mxu2 }
 0x29f   : > { %3125 = vpow2.f32 %v1348_v53  ;;  %1751 = vperm.xlu1 %3052, %v4016_v54   ;;  %4742 = vst [vmem:[#allocation56_spill] sm:$0xff] %v4027_v24 }
 0x2a0   : > { %3127 = vpow2.f32 %v1350_v0  ;;  %947 = vmax.xlane.f32.xlu0 %v946_v34 }
 0x2a3   : > { %v3122_v62 = vpop.eup %3121 }
 0x2a4   : > { %v3124_v40 = vpop.eup %3123  ;;  %v1889_v49 = vpack.c.bf16 %v3122_v62, %v4019_v36 }
 0x2a5   : > { %v3126_v17 = vpop.eup %3125  ;;  %v1890_v41 = vpack.c.bf16 %v3124_v40, %v4021_v61  ;;  %v4025_v22 = vadd.f32 %v3124_v40, %v3122_v62  ;;  %v4044_v62 = vpop.f32.mrf.mxu3 }
 0x2a6   : > { %v3128_v18 = vpop.eup %3127  ;;  %2069 = vmatmul.bf16.gmra.mxu2 %v1889_v49  ;;  %v4039_v53 = vpop.f32.mrf.mxu2  ;;  %4745 = vst [vmem:[#allocation59_spill] sm:$0xff] %v4044_v62  ;;  %v1891_v40 = vpack.c.bf16 %v3126_v17, %v3983_v56 }
 0x2a7   : > { %2158 = vmatmul.bf16.gmra.mxu3 %v1890_v41  ;;  %1162 = vperm.xlu1 %3052, %v3778_v10   ;;  %v4030_v13 = vadd.f32 %v3128_v18, %v3126_v17  ;;  %4744 = vst [vmem:[#allocation58_spill] sm:$0xff] %v4039_v53  ;;  %v1892_v49 = vpack.c.bf16 %v3128_v18, %v3987_v48  ;;  %v4063_v18 = vpop.permute.xlu0 %1741  ;;  %v4759_v53 = vld [vmem:[#allocation6_spill] sm:$0xff] }
 0x2a8   : > { %1497 = vadd.xlane.f32.xlu0 %v3789_v27  ;;  %v1000_v27 = vsub.f32 %v3775_v43, %v3778_v10  ;;  %v1853_v43 = vmul.f32 0.0, %v3891_v32 }
 0x2aa   : > { %v1048_v41 = vmul.f32 1.442695, %v1000_v27 }
 0x2ac   : > { %3129 = vpow2.f32 %v1048_v41 }
 0x2ae   : > { %v933_v34 = vpop.xlane.xlu1 %932  ;;  %v4052_v50 = vpop.f32.mrf.mxu2 }
 0x2af   : > { %v4042_v0 = vmax.f32 %v4035_v52, %v933_v34  ;;  %944 = vmax.xlane.f32.xlu2 %v943_v51  ;;  %4746 = vst [vmem:[#allocation60_spill] sm:$0xff] %v4052_v50  ;;  %v4054_v34 = vpop.f32.mrf.mxu3  ;;  %v998_v51 = vsub.f32 %v3747_v20, %v3752_v19  ;;  %v4070_v20 = vld [vmem:[#allocation2 + $0xd8] sm:$0xff]  ;;  %v4072_v19 = vpop.f32.mrf.mxu1 }
 0x2b0   : > { %4747 = vst [vmem:[#allocation61_spill] sm:$0xff] %v4054_v34 }
 0x2b1   : > { %2308 = vst.msk [vmem:[#allocation2 + $0xc8] sm:$0xff] %vm293_vm0, %v4042_v0  ;;  %v1044_v48 = vmul.f32 1.442695, %v998_v51 }
 0x2b2   : > { %v4059_v17 = vpop.eup %3129  ;;  %4750 = vst [vmem:[#allocation64_spill] sm:$0xff] %v4072_v19 }
 0x2b3   : > { %4748 = vst [vmem:[#allocation62_spill] sm:$0xff] %v4059_v17  ;;  %3131 = vpow2.f32 %v1044_v48 }
 0x2b6   : > { %2074 = vmatmul.bf16.gmra.mxu2 %v1891_v40 }
 0x2b7   : > { %2163 = vmatmul.bf16.gmra.mxu3 %v1892_v49  ;;  %v4074_v49 = vpop.f32.mrf.mxu0 }
 0x2b8   : > { %4751 = vst [vmem:[#allocation65_spill] sm:$0xff] %v4074_v49 }
 0x2bc   : > { %1167 = vperm.xlu0 %3051, %v3825_v7  }
 0x2c1   : > { %v2060_v24 = vpop.f32.mrf.mxu2 }
 0x2c2   : > { %v2149_v56 = vpop.f32.mrf.mxu3 }
 0x2c3   : > { %v2150_v10 = vadd.f32 %v2149_v56, %v2060_v24  ;;  %v4077_v24 = vpop.eup %3131  ;;  %v949_v56 = vmax.f32 %v4074_v49, %v4072_v19 }
 0x2c4   : > { %1771 = vperm.xlu0 %3051, %v4059_v17   ;;  %4752 = vst [vmem:[#allocation66_spill] sm:$0xff] %v4077_v24 }
 0x2c5   : > { %v4065_v40 = vadd.f32 %v2150_v10, %v1853_v43  ;;  %v4753_v10 = vld [vmem:[#allocation7_spill] sm:$0xff] }
 0x2c6   : > { %v4067_v27 = vpop.permute.xlu1 %1736 }
 0x2c7   : > { %4749 = vst [vmem:[#allocation63_spill] sm:$0xff] %v4065_v40  ;;  %1157 = vperm.xlu2 %3050, %v3770_v8   ;;  %v4089_v40 = vpop.permute.xlu2 %1731 }
 0x2c8   : > { %4754 = vst [vmem:[#allocation7_spill] sm:$0xff] %v4089_v40 }
 0x2c9   : > { %v4093_v25 = vpop.f32.mrf.mxu2 }
 0x2ca   : > { %4755 = vst [vmem:[#allocation67_spill] sm:$0xff] %v4093_v25  ;;  %v1855_v25 = vmul.f32 0.0, %v3958_v44 }
 0x2cc   : > { %1182 = vperm.xlu0 %3051, %v3916_v2  }
 0x2cd   : > { %v939_v32 = vpop.xlane.xlu0 %938 }
 0x2ce   : > { %v1148_v41 = vpop.permute.xlu1 %1147  ;;  %v4080_v51 = vmax.f32 %v4070_v20, %v939_v32  ;;  %v4091_v32 = vld [vmem:[#allocation2 + $0xd0] sm:$0xff] }
 0x2cf   : > { %v1266_v43 = vsub.f32 %v3502_v3, %v1148_v41  ;;  %v1267_v48 = vsub.f32 %v4753_v10, %v1148_v41  ;;  %1761 = vperm.xlu2 %3050, %v4077_v24   ;;  %v4095_v3 = vpop.f32.mrf.mxu3  ;;  %v4757_v24 = vld [vmem:[#allocation25_spill] sm:$0xff] }
 0x2d0   : > { %2310 = vst.msk [vmem:[#allocation2 + $0xd8] sm:$0xff] %vm293_vm0, %v4080_v51  ;;  %v999_v40 = vsub.f32 %v4757_v24, %v3770_v8 }
 0x2d1   : > { %v1356_v34 = vmul.f32 1.442695, %v1266_v43  ;;  %v1358_v50 = vmul.f32 1.442695, %v1267_v48  ;;  %950 = vmax.xlane.f32.xlu1 %v949_v56  ;;  %4756 = vst [vmem:[#allocation68_spill] sm:$0xff] %v4095_v3 }
 0x2d3   : > { %3133 = vpow2.f32 %v1356_v34 }
 0x2d4   : > { %3135 = vpow2.f32 %v1358_v50  ;;  %v1046_v50 = vmul.f32 1.442695, %v999_v40 }
 0x2d6   : > { %3137 = vpow2.f32 %v1046_v50 }
 0x2d9   : > { %v3134_v19 = vpop.eup %3133  ;;  %v936_v41 = vpop.xlane.xlu2 %935 }
 0x2da   : > { %v3136_v10 = vpop.eup %3135  ;;  %v4098_v49 = vmax.f32 %v4091_v32, %v936_v41 }
 0x2db   : > { %v4102_v43 = vadd.f32 %v3136_v10, %v3134_v19 }
 0x2dc   : > { %2309 = vst.msk [vmem:[#allocation2 + $0xd0] sm:$0xff] %vm293_vm0, %v4098_v49  ;;  %v4111_v24 = vpop.eup %3137 }
 0x2dd   : > { %4761 = vst [vmem:[#allocation5_spill] sm:$0xff] %v4111_v24 }
 0x2e0   : > { %v2065_v34 = vpop.f32.mrf.mxu2 }
 0x2e1   : > { %v2154_v56 = vpop.f32.mrf.mxu3  ;;  %v1143_v48 = vpop.permute.xlu2 %1142 }
 0x2e2   : > { %v2155_v3 = vadd.f32 %v2154_v56, %v2065_v34  ;;  %v1264_v62 = vsub.f32 %v4758_v33, %v1143_v48  ;;  %v1265_v41 = vsub.f32 %v4759_v53, %v1143_v48  ;;  %v4117_v33 = vld [vmem:[#allocation2 + $0xe0] sm:$0xff]  ;;  %v1153_v53 = vpop.permute.xlu0 %1152  ;;  %v4767_v48 = vld [vmem:[#allocation12_spill] sm:$0xff] }
 0x2e4   : > { %v1352_v54 = vmul.f32 1.442695, %v1264_v62  ;;  %v1354_v30 = vmul.f32 1.442695, %v1265_v41  ;;  %v4109_v8 = vadd.f32 %v2155_v3, %v1855_v25 }
 0x2e6   : > { %4760 = vst [vmem:[#allocation25_spill] sm:$0xff] %v4109_v8  ;;  %3139 = vpow2.f32 %v1352_v54  ;;  %v1003_v54 = vsub.f32 %v3854_v21, %v3861_v31 }
 0x2e7   : > { %3141 = vpow2.f32 %v1354_v30 }
 0x2e8   : > { %v4157_v8 = vpop.f32.mrf.mxu2 }
 0x2e9   : > { %v4149_v56 = vpop.permute.xlu2 %1746  ;;  %4770 = vst [vmem:[#allocation12_spill] sm:$0xff] %v4157_v8 }
 0x2ea   : > { %1766 = vperm.xlu1 %3052, %v4111_v24   ;;  %4766 = vst [vmem:[#allocation72_spill] sm:$0xff] %v4149_v56 }
 0x2ec   : > { %v3140_v40 = vpop.eup %3139 }
 0x2ed   : > { %v3142_v4 = vpop.eup %3141  ;;  %v1893_v17 = vpack.c.bf16 %v3134_v19, %v3140_v40  ;;  %v4137_v19 = vld [vmem:[#allocation2 + $0xf0] sm:$0xff] }
 0x2ee   : > { %v1894_v44 = vpack.c.bf16 %v3136_v10, %v3142_v4  ;;  %v4114_v34 = vadd.f32 %v3142_v4, %v3140_v40  ;;  %v1054_v4 = vmul.f32 1.442695, %v1003_v54  ;;  %4763 = vst [vmem:[#allocation69_spill] sm:$0xff] %v4137_v19  ;;  %v4768_v40 = vld [vmem:[#allocation13_spill] sm:$0xff] }
 0x2ef   : > { %2079 = vmatmul.bf16.gmra.mxu2 %v1893_v17 }
 0x2f0   : > { %2168 = vmatmul.bf16.gmra.mxu3 %v1894_v44  ;;  %3143 = vpow2.f32 %v1054_v4 }
 0x2f6   : > { %1509 = vadd.xlane.f32.xlu0 %v3870_v35  ;;  %v4127_v62 = vpop.eup %3143  ;;  %v1001_v35 = vsub.f32 %v3822_v37, %v3825_v7  ;;  %v1432_v7 = vld [vmem:[#allocation3] sm:$0xff] }
 0x2f7   : > { %4762 = vst [vmem:[#allocation6_spill] sm:$0xff] %v4127_v62 }
 0x2f8   : > { %1500 = vadd.xlane.f32.xlu2 %v3800_v15  ;;  %v4132_v15 = vpop.permute.xlu0 %1756  ;;  %v1050_v17 = vmul.f32 1.442695, %v1001_v35 }
 0x2f9   : > { %v942_v25 = vpop.xlane.xlu1 %941 }
 0x2fa   : > { %v4121_v30 = vmax.f32 %v4117_v33, %v942_v25  ;;  %3145 = vpow2.f32 %v1050_v17  ;;  %v4769_v25 = vld [vmem:[#allocation14_spill] sm:$0xff] }
 0x2fb   : > { %v1464_v54 = vmul.f32 %v4769_v25, %v1432_v7  ;;  %v1002_v7 = vsub.f32 %v3829_v11, %v3834_v28  ;;  %v4773_v25 = vld [vmem:[#allocation9_spill] sm:$0xff] }
 0x2fc   : > { %2311 = vst.msk [vmem:[#allocation2 + $0xe0] sm:$0xff] %vm293_vm0, %v4121_v30 }
 0x300   : > { %v4146_v37 = vpop.eup %3145 }
 0x301   : > { %4765 = vst [vmem:[#allocation71_spill] sm:$0xff] %v4146_v37 }
 0x30a   : > { %1786 = vperm.xlu0 %3051, %v4127_v62  }
 0x310   : > { %1172 = vperm.xlu2 %3050, %v3834_v28   ;;  %v4776_v28 = vld [vmem:[#allocation10_spill] sm:$0xff] }
 0x311   : > { %v4135_v21 = vpop.permute.xlu1 %1751 }
 0x312   : > { %1197 = vperm.xlu0 %3051, %v4000_v16  }
 0x313   : > { %v948_v3 = vpop.xlane.xlu0 %947 }
 0x314   : > { %v4141_v10 = vmax.f32 %v4137_v19, %v948_v3  ;;  %1503 = vadd.xlane.f32.xlu1 %v3817_v63  ;;  %v4155_v3 = vld [vmem:[#allocation2 + $0xe8] sm:$0xff] }
 0x316   : > { %4764 = vst [vmem:[#allocation70_spill] sm:$0xff] %v4141_v10 }
 0x317   : > { %2313 = vst.msk [vmem:[#allocation2 + $0xf0] sm:$0xff] %vm293_vm0, %v4141_v10 }
 0x318   : > { %1776 = vperm.xlu2 %3050, %v4146_v37   ;;  %v4159_v37 = vpop.f32.mrf.mxu3 }
 0x319   : > { %v1163_v50 = vpop.permute.xlu1 %1162  ;;  %4771 = vst [vmem:[#allocation13_spill] sm:$0xff] %v4159_v37 }
 0x31a   : > { %v1272_v41 = vsub.f32 %v4767_v48, %v1163_v50  ;;  %v1273_v44 = vsub.f32 %v4768_v40, %v1163_v50  ;;  %v4772_v40 = vld [vmem:[#allocation8_spill] sm:$0xff] }
 0x31b   : > { %v1498_v4 = vpop.xlane.xlu0 %1497 }
 0x31c   : > { %v1368_v35 = vmul.f32 1.442695, %v1272_v41  ;;  %v1370_v63 = vmul.f32 1.442695, %v1273_v44  ;;  %v1592_v17 = vadd.f32 %v1498_v4, %v1464_v54  ;;  %v1268_v44 = vsub.f32 %v4772_v40, %v1153_v53  ;;  %v4777_v40 = vld [vmem:[#allocation11_spill] sm:$0xff] }
 0x31d   : > { %v1269_v54 = vsub.f32 %v4773_v25, %v1153_v53 }
 0x31e   : > { %3147 = vpow2.f32 %v1368_v35  ;;  %1625 = vst.msk [vmem:[#allocation3] sm:$0xff] %vm293_vm0, %v1592_v17  ;;  %v1360_v35 = vmul.f32 1.442695, %v1268_v44 }
 0x31f   : > { %3149 = vpow2.f32 %v1370_v63  ;;  %v1362_v17 = vmul.f32 1.442695, %v1269_v54 }
 0x322   : > { %v945_v56 = vpop.xlane.xlu2 %944 }
 0x323   : > { %v4162_v48 = vmax.f32 %v4155_v3, %v945_v56  ;;  %v1052_v56 = vmul.f32 1.442695, %v1002_v7  ;;  %v4778_v7 = vld [vmem:[#allocation15_spill] sm:$0xff] }
 0x324   : > { %v4164_v50 = vpop.eup %3147 }
 0x325   : > { %v4168_v41 = vpop.eup %3149  ;;  %2312 = vst.msk [vmem:[#allocation2 + $0xe8] sm:$0xff] %vm293_vm0, %v4162_v48  ;;  %3151 = vpow2.f32 %v1052_v56 }
 0x326   : > { %v4176_v4 = vadd.f32 %v4168_v41, %v4164_v50  ;;  %3153 = vpow2.f32 %v1360_v35 }
 0x327   : > { %3155 = vpow2.f32 %v1362_v17 }
 0x329   : > { %v4178_v63 = vpop.f32.mrf.mxu2 }
 0x32a   : > { %4774 = vst [vmem:[#allocation14_spill] sm:$0xff] %v4178_v63  ;;  %v4180_v37 = vpop.f32.mrf.mxu3  ;;  %v1158_v11 = vpop.permute.xlu2 %1157  ;;  %v4779_v63 = vld [vmem:[#allocation16_spill] sm:$0xff] }
 0x32b   : > { %4775 = vst [vmem:[#allocation8_spill] sm:$0xff] %v4180_v37  ;;  %v1270_v8 = vsub.f32 %v4776_v28, %v1158_v11  ;;  %v1271_v24 = vsub.f32 %v4777_v40, %v1158_v11  ;;  %v4187_v28 = vpop.eup %3151 }
 0x32c   : > { %v4189_v56 = vpop.eup %3153 }
 0x32d   : > { %v1364_v62 = vmul.f32 1.442695, %v1270_v8  ;;  %v1366_v53 = vmul.f32 1.442695, %v1271_v24  ;;  %1177 = vperm.xlu1 %3052, %v3861_v31   ;;  %v1858_v8 = vmul.f32 0.0, %v4067_v27  ;;  %v4192_v24 = vpop.eup %3155 }
 0x32e   : > { %v1168_v25 = vpop.permute.xlu0 %1167 }
 0x32f   : > { %3157 = vpow2.f32 %v1364_v62  ;;  %v1274_v44 = vsub.f32 %v4778_v7, %v1168_v25  ;;  %v1275_v54 = vsub.f32 %v4779_v63, %v1168_v25 }
 0x330   : > { %3159 = vpow2.f32 %v1366_v53 }
 0x331   : > { %v1372_v37 = vmul.f32 1.442695, %v1274_v44  ;;  %v1374_v19 = vmul.f32 1.442695, %v1275_v54  ;;  %v2072_v10 = vpop.f32.mrf.mxu2 }
 0x332   : > { %v2161_v11 = vpop.f32.mrf.mxu3 }
 0x333   : > { %3161 = vpow2.f32 %v1372_v37  ;;  %v2162_v31 = vadd.f32 %v2161_v11, %v2072_v10  ;;  %v1006_v11 = vsub.f32 %v3938_v6, %v3944_v9 }
 0x334   : > { %3163 = vpow2.f32 %v1374_v19  ;;  %v1859_v19 = vmul.f32 0.0, %v4063_v18 }
 0x335   : > { %v3158_v62 = vpop.eup %3157  ;;  %1781 = vperm.xlu1 %3052, %v4187_v28   ;;  %v4195_v35 = vadd.f32 %v2162_v31, %v1858_v8  ;;  %v4210_v8 = vld [vmem:[#allocation2 + $0xf8] sm:$0xff] }
 0x336   : > { %v3160_v63 = vpop.eup %3159  ;;  %v1895_v17 = vpack.c.bf16 %v3158_v62, %v4189_v56 }
 0x337   : > { %4780 = vst [vmem:[#allocation9_spill] sm:$0xff] %v4195_v35  ;;  %v1896_v40 = vpack.c.bf16 %v3160_v63, %v4192_v24  ;;  %v4199_v53 = vadd.f32 %v3160_v63, %v3158_v62  ;;  %v1060_v62 = vmul.f32 1.442695, %v1006_v11 }
 0x338   : > { %2084 = vmatmul.bf16.gmra.mxu2 %v1895_v17 }
 0x339   : > { %v3162_v25 = vpop.eup %3161  ;;  %2173 = vmatmul.bf16.gmra.mxu3 %v1896_v40  ;;  %v2075_v27 = vpop.f32.mrf.mxu2  ;;  %3165 = vpow2.f32 %v1060_v62 }
 0x33a   : > { %v3164_v10 = vpop.eup %3163  ;;  %v2164_v37 = vpop.f32.mrf.mxu3  ;;  %v1897_v18 = vpack.c.bf16 %v3162_v25, %v4164_v50 }
 0x33b   : > { %v2165_v7 = vadd.f32 %v2164_v37, %v2075_v27  ;;  %v4202_v44 = vadd.f32 %v3164_v10, %v3162_v25  ;;  %v4224_v40 = vpop.permute.xlu0 %1771  ;;  %v4234_v25 = vpop.permute.xlu2 %1761  ;;  %v1436_v27 = vld [vmem:[#allocation3 + $0x20] sm:$0xff] }
 0x33c   : > { %1518 = vadd.xlane.f32.xlu0 %v3913_v42  ;;  %v1898_v42 = vpack.c.bf16 %v3164_v10, %v4168_v41  ;;  %4782 = vst [vmem:[#allocation11_spill] sm:$0xff] %v4234_v25 }
 0x33d   : > { %v4205_v54 = vadd.f32 %v2165_v7, %v1859_v19  ;;  %v4784_v7 = vld [vmem:[#allocation21_spill] sm:$0xff] }
 0x33f   : > { %4781 = vst [vmem:[#allocation10_spill] sm:$0xff] %v4205_v54  ;;  %v4219_v6 = vpop.eup %3165  ;;  %v1861_v54 = vmul.f32 0.0, %v4135_v21 }
 0x341   : > { %1506 = vadd.xlane.f32.xlu2 %v3866_v39  ;;  %v1004_v39 = vsub.f32 %v3911_v29, %v3916_v2  ;;  %v1433_v29 = vld [vmem:[#allocation3 + $0x8] sm:$0xff]  ;;  %v4783_v2 = vld [vmem:[#allocation23_spill] sm:$0xff] }
 0x342   : > { %v1468_v10 = vmul.f32 %v4783_v2, %v1436_v27  ;;  %v1465_v11 = vmul.f32 %v4784_v7, %v1433_v29  ;;  %v4787_v29 = vld [vmem:[#allocation17_spill] sm:$0xff] }
 0x343   : > { %v1056_v17 = vmul.f32 1.442695, %v1004_v39  ;;  %v4231_v41 = vpop.permute.xlu0 %1182 }
 0x344   : > { %v951_v31 = vpop.xlane.xlu1 %950 }
 0x345   : > { %v4213_v63 = vmax.f32 %v4210_v8, %v951_v31  ;;  %3167 = vpow2.f32 %v1056_v17  ;;  %v4238_v31 = vpop.f32.mrf.mxu2 }
 0x347   : > { %2314 = vst.msk [vmem:[#allocation2 + $0xf8] sm:$0xff] %vm293_vm0, %v4213_v63 }
 0x348   : > { %2089 = vmatmul.bf16.gmra.mxu2 %v1897_v18 }
 0x349   : > { %2178 = vmatmul.bf16.gmra.mxu3 %v1898_v42  ;;  %v1005_v42 = vsub.f32 %v3902_v47, %v3905_v46 }
 0x34b   : > { %v4229_v50 = vpop.eup %3167  ;;  %v1058_v39 = vmul.f32 1.442695, %v1005_v42 }
 0x34d   : > { %3169 = vpow2.f32 %v1058_v39 }
 0x350   : > { %1801 = vperm.xlu0 %3051, %v4219_v6  }
 0x358   : > { %1212 = vperm.xlu0 %3051, %v4098_v49  }
 0x359   : > { %1187 = vperm.xlu2 %3050, %v3905_v46  }
 0x35c   : > { %v4255_v21 = vpop.permute.xlu1 %1766 }
 0x35f   : > { %1512 = vadd.xlane.f32.xlu1 %v3900_v5  ;;  %v4240_v5 = vpop.f32.mrf.mxu3 }
 0x360   : > { %4785 = vst [vmem:[#allocation15_spill] sm:$0xff] %v4240_v5 }
 0x361   : > { %1791 = vperm.xlu2 %3050, %v4229_v50  }
 0x369   : > { %v1510_v37 = vpop.xlane.xlu0 %1509 }
 0x36a   : > { %v1596_v19 = vadd.f32 %v1510_v37, %v1468_v10  ;;  %v4786_v10 = vld [vmem:[#allocation18_spill] sm:$0xff] }
 0x36b   : > { %v1501_v62 = vpop.xlane.xlu2 %1500 }
 0x36c   : > { %1629 = vst.msk [vmem:[#allocation3 + $0x20] sm:$0xff] %vm293_vm0, %v1596_v19  ;;  %v1593_v18 = vadd.f32 %v1501_v62, %v1465_v11  ;;  %v4252_v11 = vpop.eup %3169  ;;  %v1862_v62 = vmul.f32 0.0, %v4132_v15 }
 0x36e   : > { %1626 = vst.msk [vmem:[#allocation3 + $0x8] sm:$0xff] %vm293_vm0, %v1593_v18 }
 0x372   : > { %v2080_v17 = vpop.f32.mrf.mxu2 }
 0x373   : > { %v1173_v27 = vpop.permute.xlu2 %1172  ;;  %v2169_v2 = vpop.f32.mrf.mxu3 }
 0x374   : > { %v1276_v37 = vsub.f32 %v4786_v10, %v1173_v27  ;;  %v1277_v7 = vsub.f32 %v4787_v29, %v1173_v27  ;;  %v2170_v35 = vadd.f32 %v2169_v2, %v2080_v17 }
 0x376   : > { %v1376_v25 = vmul.f32 1.442695, %v1276_v37  ;;  %v1378_v5 = vmul.f32 1.442695, %v1277_v7  ;;  %v4249_v19 = vadd.f32 %v2170_v35, %v1861_v54  ;;  %v4788_v54 = vld [vmem:[#allocation22_spill] sm:$0xff]  ;;  %v4789_v7 = vld [vmem:[#allocation19_spill] sm:$0xff] }
 0x378   : > { %3171 = vpow2.f32 %v1376_v25  ;;  %1192 = vperm.xlu1 %3052, %v3944_v9   ;;  %v1434_v9 = vld [vmem:[#allocation3 + $0x10] sm:$0xff] }
 0x379   : > { %3173 = vpow2.f32 %v1378_v5  ;;  %v1466_v25 = vmul.f32 %v4788_v54, %v1434_v9  ;;  %v1009_v5 = vsub.f32 %v4035_v52, %v4042_v0 }
 0x37a   : > { %v2082_v47 = vpop.f32.mrf.mxu2 }
 0x37b   : > { %v2171_v46 = vpop.f32.mrf.mxu3  ;;  %v1066_v2 = vmul.f32 1.442695, %v1009_v5 }
 0x37c   : > { %v2172_v18 = vadd.f32 %v2171_v46, %v2082_v47  ;;  %v4273_v37 = vpop.permute.xlu0 %1786  ;;  %v4790_v46 = vld [vmem:[#allocation20_spill] sm:$0xff] }
 0x37d   : > { %3175 = vpow2.f32 %v1066_v2 }
 0x37e   : > { %v3172_v42 = vpop.eup %3171  ;;  %v4257_v17 = vadd.f32 %v2172_v18, %v1862_v62 }
 0x37f   : > { %v3174_v27 = vpop.eup %3173 }
 0x380   : > { %1796 = vperm.xlu1 %3052, %v4252_v11   ;;  %v4260_v35 = vadd.f32 %v3174_v27, %v3172_v42 }
 0x382   : > { %1527 = vadd.xlane.f32.xlu0 %v3993_v60  ;;  %v1007_v60 = vsub.f32 %v3985_v57, %v4000_v16  ;;  %v1520_v57 = vadd.f32 %v4021_v61, %v4019_v36  ;;  %v1435_v61 = vld [vmem:[#allocation3 + $0x18] sm:$0xff] }
 0x383   : > { %v4268_v10 = vpop.eup %3175 }
 0x384   : > { %v1062_v52 = vmul.f32 1.442695, %v1007_v60  ;;  %v4279_v9 = vpop.permute.xlu0 %1197 }
 0x386   : > { %3177 = vpow2.f32 %v1062_v52 }
 0x387   : > { %v1504_v15 = vpop.xlane.xlu1 %1503 }
 0x388   : > { %v1594_v39 = vadd.f32 %v1504_v15, %v1466_v25  ;;  %v1439_v15 = vld [vmem:[#allocation3 + $0x38] sm:$0xff] }
 0x389   : > { %v1471_v52 = vmul.f32 %v3807_v1, %v1439_v15  ;;  %v1008_v1 = vsub.f32 %v3973_v14, %v3979_v45  ;;  %v4793_v15 = vld [vmem:[#allocation27_spill] sm:$0xff] }
 0x38a   : > { %1627 = vst.msk [vmem:[#allocation3 + $0x10] sm:$0xff] %vm293_vm0, %v1594_v39  ;;  %1515 = vadd.xlane.f32.xlu2 %v3936_v38  ;;  %v4286_v39 = vpop.permute.xlu2 %1776 }
 0x38c   : > { %v4283_v16 = vpop.eup %3177 }
 0x396   : > { %1816 = vperm.xlu0 %3051, %v4268_v10  }
 0x39e   : > { %1227 = vperm.xlu0 %3051, %v4162_v48  }
 0x39f   : > { %v1178_v29 = vpop.permute.xlu1 %1177 }
 0x3a0   : > { %v1278_v47 = vsub.f32 %v4789_v7, %v1178_v29  ;;  %v1279_v62 = vsub.f32 %v4790_v46, %v1178_v29  ;;  %v4791_v7 = vld [vmem:[#allocation24_spill] sm:$0xff] }
 0x3a2   : > { %v1380_v38 = vmul.f32 1.442695, %v1278_v47  ;;  %v1382_v18 = vmul.f32 1.442695, %v1279_v62  ;;  %1202 = vperm.xlu2 %3050, %v3979_v45   ;;  %v1467_v47 = vmul.f32 %v4791_v7, %v1435_v61  ;;  %v1064_v61 = vmul.f32 1.442695, %v1008_v1 }
 0x3a3   : > { %v1864_v7 = vmul.f32 0.0, %v4255_v21 }
 0x3a4   : > { %3179 = vpow2.f32 %v1380_v38 }
 0x3a5   : > { %3181 = vpow2.f32 %v1382_v18 }
 0x3aa   : > { %v3180_v54 = vpop.eup %3179  ;;  %1806 = vperm.xlu2 %3050, %v4283_v16   ;;  %1521 = vadd.xlane.f32.xlu1 %v1520_v57 }
 0x3ab   : > { %v3182_v25 = vpop.eup %3181  ;;  %v1899_v5 = vpack.c.bf16 %v3180_v54, %v3172_v42  ;;  %v1280_v42 = vsub.f32 %v3763_v55, %v4231_v41 }
 0x3ac   : > { %v1900_v2 = vpack.c.bf16 %v3182_v25, %v3174_v27  ;;  %v4288_v60 = vadd.f32 %v3182_v25, %v3180_v54  ;;  %v4792_v27 = vld [vmem:[#allocation26_spill] sm:$0xff] }
 0x3ad   : > { %2094 = vmatmul.bf16.gmra.mxu2 %v1899_v5  ;;  %v1281_v38 = vsub.f32 %v4792_v27, %v4231_v41  ;;  %v1384_v18 = vmul.f32 1.442695, %v1280_v42 }
 0x3ae   : > { %2183 = vmatmul.bf16.gmra.mxu3 %v1900_v2 }
 0x3af   : > { %v1519_v29 = vpop.xlane.xlu0 %1518  ;;  %v1386_v54 = vmul.f32 1.442695, %v1281_v38  ;;  %3183 = vpow2.f32 %v1384_v18 }
 0x3b0   : > { %v1599_v36 = vadd.f32 %v1519_v29, %v1471_v52  ;;  %v4794_v52 = vld [vmem:[#allocation28_spill] sm:$0xff] }
 0x3b1   : > { %3185 = vpow2.f32 %v1386_v54  ;;  %v4321_v54 = vpop.permute.xlu1 %1781 }
 0x3b2   : > { %1632 = vst.msk [vmem:[#allocation3 + $0x38] sm:$0xff] %vm293_vm0, %v1599_v36 }
 0x3b4   : > { %v1507_v46 = vpop.xlane.xlu2 %1506 }
 0x3b5   : > { %v1595_v62 = vadd.f32 %v1507_v46, %v1467_v47  ;;  %v4307_v14 = vpop.eup %3183 }
 0x3b7   : > { %1628 = vst.msk [vmem:[#allocation3 + $0x18] sm:$0xff] %vm293_vm0, %v1595_v62  ;;  %v4310_v46 = vpop.eup %3185 }
 0x3bb   : > { %v4298_v57 = vpop.f32.mrf.mxu2 }
 0x3bc   : > { %v4302_v25 = vpop.f32.mrf.mxu3  ;;  %v1188_v5 = vpop.permute.xlu2 %1187 }
 0x3bd   : > { %v1282_v2 = vsub.f32 %v4793_v15, %v1188_v5  ;;  %v1283_v29 = vsub.f32 %v4794_v52, %v1188_v5  ;;  %v1012_v15 = vsub.f32 %v4117_v33, %v4121_v30  ;;  %v1437_v52 = vld [vmem:[#allocation3 + $0x28] sm:$0xff] }
 0x3bf   : > { %v1388_v55 = vmul.f32 1.442695, %v1282_v2  ;;  %v1390_v36 = vmul.f32 1.442695, %v1283_v29 }
 0x3c1   : > { %3187 = vpow2.f32 %v1388_v55  ;;  %v1072_v55 = vmul.f32 1.442695, %v1012_v15 }
 0x3c2   : > { %3189 = vpow2.f32 %v1390_v36  ;;  %v1469_v36 = vmul.f32 %v3819_v26, %v1437_v52  ;;  %v4335_v33 = vpop.permute.xlu0 %1801  ;;  %v1287_v26 = vsub.f32 %v3843_v12, %v4279_v9 }
 0x3c3   : > { %v2087_v41 = vpop.f32.mrf.mxu2  ;;  %1207 = vperm.xlu1 %3052, %v4042_v0   ;;  %3191 = vpow2.f32 %v1064_v61 }
 0x3c4   : > { %v2176_v45 = vpop.f32.mrf.mxu3  ;;  %3193 = vpow2.f32 %v1072_v55 }
 0x3c5   : > { %v2177_v47 = vadd.f32 %v2176_v45, %v2087_v41 }
 0x3c7   : > { %v3188_v62 = vpop.eup %3187  ;;  %v4312_v42 = vadd.f32 %v2177_v47, %v1864_v7  ;;  %v1286_v7 = vsub.f32 %v3841_v58, %v4279_v9  ;;  %v1442_v58 = vld [vmem:[#allocation3 + $0x50] sm:$0xff] }
 0x3c8   : > { %v3190_v27 = vpop.eup %3189  ;;  %1536 = vadd.xlane.f32.xlu0 %v4102_v43  ;;  %v1901_v38 = vpack.c.bf16 %v3188_v62, %v4307_v14  ;;  %v1865_v43 = vmul.f32 0.0, %v4224_v40  ;;  %v1010_v40 = vsub.f32 %v4091_v32, %v4098_v49  ;;  %v1474_v15 = vmul.f32 %v3879_v59, %v1442_v58  ;;  %v4796_v59 = vld [vmem:[#allocation31_spill] sm:$0xff] }
 0x3c9   : > { %v1902_v18 = vpack.c.bf16 %v3190_v27, %v4310_v46  ;;  %v4317_v0 = vadd.f32 %v3190_v27, %v3188_v62  ;;  %v4319_v1 = vpop.eup %3191  ;;  %v1398_v62 = vmul.f32 1.442695, %v1287_v26 }
 0x3ca   : > { %2099 = vmatmul.bf16.gmra.mxu2 %v1901_v38  ;;  %v4332_v45 = vpop.eup %3193  ;;  %v1068_v47 = vmul.f32 1.442695, %v1010_v40 }
 0x3cb   : > { %2188 = vmatmul.bf16.gmra.mxu3 %v1902_v18  ;;  %v2090_v21 = vpop.f32.mrf.mxu2  ;;  %1811 = vperm.xlu1 %3052, %v4319_v1   ;;  %v4795_v18 = vld [vmem:[#allocation29_spill] sm:$0xff] }
 0x3cc   : > { %v2179_v5 = vpop.f32.mrf.mxu3  ;;  %3195 = vpow2.f32 %v1068_v47 }
 0x3cd   : > { %v2180_v2 = vadd.f32 %v2179_v5, %v2090_v21  ;;  %v4346_v5 = vpop.permute.xlu0 %1212 }
 0x3cf   : > { %v4327_v29 = vadd.f32 %v2180_v2, %v1865_v43  ;;  %v4356_v2 = vpop.permute.xlu2 %1791 }
 0x3d2   : > { %v1513_v61 = vpop.xlane.xlu1 %1512  ;;  %v4348_v12 = vpop.eup %3195 }
 0x3d3   : > { %v1597_v41 = vadd.f32 %v1513_v61, %v1469_v36  ;;  %1524 = vadd.xlane.f32.xlu2 %v4025_v22  ;;  %v1396_v22 = vmul.f32 1.442695, %v1286_v7  ;;  %v1438_v7 = vld [vmem:[#allocation3 + $0x30] sm:$0xff] }
 0x3d4   : > { %v1470_v26 = vmul.f32 %v4796_v59, %v1438_v7 }
 0x3d5   : > { %1630 = vst.msk [vmem:[#allocation3 + $0x28] sm:$0xff] %vm293_vm0, %v1597_v41  ;;  %3197 = vpow2.f32 %v1396_v22 }
 0x3d6   : > { %3199 = vpow2.f32 %v1398_v62  ;;  %v4797_v62 = vld [vmem:[#allocation33_spill] sm:$0xff] }
 0x3db   : > { %v4350_v9 = vpop.eup %3197 }
 0x3dc   : > { %1831 = vperm.xlu0 %3051, %v4332_v45  }
 0x3ea   : > { %v1193_v27 = vpop.permute.xlu1 %1192 }
 0x3eb   : > { %v1284_v38 = vsub.f32 %v3812_v23, %v1193_v27  ;;  %v1285_v21 = vsub.f32 %v4795_v18, %v1193_v27  ;;  %1217 = vperm.xlu2 %3050, %v4080_v51   ;;  %v4353_v23 = vpop.eup %3199 }
 0x3ed   : > { %v1392_v49 = vmul.f32 1.442695, %v1284_v38  ;;  %v1394_v32 = vmul.f32 1.442695, %v1285_v21  ;;  %v4798_v38 = vld [vmem:[#allocation32_spill] sm:$0xff]  ;;  %v1011_v21 = vsub.f32 %v4070_v20, %v4080_v51  ;;  %v2352_v51 = vld [vmem:[#allocation3 + $0x10] sm:$0xff] }
 0x3ef   : > { %3201 = vpow2.f32 %v1392_v49  ;;  %v1070_v58 = vmul.f32 1.442695, %v1011_v21 }
 0x3f0   : > { %3203 = vpow2.f32 %v1394_v32 }
 0x3f2   : > { %v4378_v20 = vpop.permute.xlu1 %1796 }
 0x3f3   : > { %1821 = vperm.xlu2 %3050, %v4348_v12  }
 0x3f5   : > { %v3202_v43 = vpop.eup %3201  ;;  %v1528_v52 = vpop.xlane.xlu0 %1527  ;;  %1530 = vadd.xlane.f32.xlu1 %v4030_v13 }
 0x3f6   : > { %v3204_v55 = vpop.eup %3203  ;;  %v1602_v36 = vadd.f32 %v1528_v52, %v1474_v15  ;;  %v1903_v61 = vpack.c.bf16 %v4350_v9, %v3202_v43  ;;  %v1015_v15 = vsub.f32 %v4210_v8, %v4213_v63  ;;  %v1440_v8 = vld [vmem:[#allocation3 + $0x40] sm:$0xff] }
 0x3f7   : > { %v1904_v41 = vpack.c.bf16 %v4353_v23, %v3204_v55  ;;  %v4361_v40 = vadd.f32 %v3204_v55, %v3202_v43 }
 0x3f8   : > { %1635 = vst.msk [vmem:[#allocation3 + $0x50] sm:$0xff] %vm293_vm0, %v1602_v36  ;;  %2104 = vmatmul.bf16.gmra.mxu2 %v1903_v61  ;;  %v1078_v43 = vmul.f32 1.442695, %v1015_v15 }
 0x3f9   : > { %2193 = vmatmul.bf16.gmra.mxu3 %v1904_v41 }
 0x3fd   : > { %v1516_v47 = vpop.xlane.xlu2 %1515 }
 0x3fe   : > { %v1598_v22 = vadd.f32 %v1516_v47, %v1470_v26  ;;  %v4387_v47 = vpop.f32.mrf.mxu2 }
 0x400   : > { %1631 = vst.msk [vmem:[#allocation3 + $0x30] sm:$0xff] %vm293_vm0, %v1598_v22  ;;  %v4389_v22 = vpop.f32.mrf.mxu3 }
 0x405   : > { %v1203_v13 = vpop.permute.xlu2 %1202 }
 0x406   : > { %v1288_v27 = vsub.f32 %v4797_v62, %v1203_v13  ;;  %v1289_v18 = vsub.f32 %v4798_v38, %v1203_v13  ;;  %1545 = vadd.xlane.f32.xlu0 %v4176_v4  ;;  %v1013_v62 = vsub.f32 %v4155_v3, %v4162_v48 }
 0x408   : > { %v1400_v49 = vmul.f32 1.442695, %v1288_v27  ;;  %v1402_v32 = vmul.f32 1.442695, %v1289_v18  ;;  %v4391_v13 = vpop.permute.xlu0 %1816  ;;  %v1074_v38 = vmul.f32 1.442695, %v1013_v62 }
 0x409   : > { %v1867_v18 = vmul.f32 0.0, %v4321_v54  ;;  %v1868_v54 = vmul.f32 0.0, %v4273_v37  ;;  %v4803_v62 = vld [vmem:[#allocation45_spill] sm:$0xff]  ;;  %v1538_v37 = vadd.f32 %v4192_v24, %v4189_v56  ;;  %v4806_v56 = vld [vmem:[#allocation39_spill] sm:$0xff] }
 0x40a   : > { %3205 = vpow2.f32 %v1400_v49  ;;  %v1293_v24 = vsub.f32 %v4806_v56, %v4346_v5 }
 0x40b   : > { %3207 = vpow2.f32 %v1402_v32  ;;  %v4800_v32 = vld [vmem:[#allocation70_spill] sm:$0xff] }
 0x40c   : > { %3209 = vpow2.f32 %v1070_v58 }
 0x40d   : > { %3211 = vpow2.f32 %v1078_v43  ;;  %v4801_v43 = vld [vmem:[#allocation37_spill] sm:$0xff] }
 0x40e   : > { %1222 = vperm.xlu1 %3052, %v4121_v30   ;;  %3213 = vrcp.f32 %v2352_v51  ;;  %v4799_v30 = vld [vmem:[#allocation38_spill] sm:$0xff] }
 0x40f   : > { %v1472_v41 = vmul.f32 %v4799_v30, %v1440_v8  ;;  %3215 = vpow2.f32 %v1074_v38  ;;  %v4802_v8 = vld [vmem:[#allocation36_spill] sm:$0xff] }
 0x410   : > { %v3206_v52 = vpop.eup %3205  ;;  %v4396_v49 = vpop.permute.xlu0 %1227 }
 0x411   : > { %v3208_v55 = vpop.eup %3207 }
 0x412   : > { %v4374_v36 = vadd.f32 %v3208_v55, %v3206_v52  ;;  %v4376_v4 = vpop.eup %3209 }
 0x413   : > { %v4381_v61 = vpop.eup %3211 }
 0x414   : > { %v3214_v26 = vpop.eup %3213 }
 0x416   : > { %1826 = vperm.xlu1 %3052, %v4376_v4  }
 0x41a   : > { %1846 = vperm.xlu0 %3051, %v4381_v61  }
 0x41c   : > { %1533 = vadd.xlane.f32.xlu2 %v4114_v34 }
 0x41d   : > { %v1522_v7 = vpop.xlane.xlu1 %1521 }
 0x41e   : > { %v1600_v59 = vadd.f32 %v1522_v7, %v1472_v41  ;;  %v1445_v41 = vld [vmem:[#allocation3 + $0x68] sm:$0xff] }
 0x420   : > { %1633 = vst.msk [vmem:[#allocation3 + $0x40] sm:$0xff] %vm293_vm0, %v1600_v59 }
 0x422   : > { %2426 = vperm.xlu0 %3051, %v3214_v26  }
 0x430   : > { %v2095_v27 = vpop.f32.mrf.mxu2 }
 0x431   : > { %v2184_v34 = vpop.f32.mrf.mxu3 }
 0x432   : > { %v2185_v21 = vadd.f32 %v2184_v34, %v2095_v27  ;;  %v1477_v27 = vmul.f32 %v4803_v62, %v1445_v41  ;;  %v4405_v34 = vpop.eup %3215  ;;  %v1441_v41 = vld [vmem:[#allocation3 + $0x48] sm:$0xff] }
 0x434   : > { %1232 = vperm.xlu2 %3050, %v4800_v32   ;;  %v4399_v58 = vadd.f32 %v2185_v21, %v1867_v18 }
 0x435   : > { %v1208_v15 = vpop.permute.xlu1 %1207 }
 0x436   : > { %v1290_v51 = vsub.f32 %v4801_v43, %v1208_v15  ;;  %v1291_v30 = vsub.f32 %v4802_v8, %v1208_v15  ;;  %v4410_v15 = vpop.permute.xlu2 %1806 }
 0x438   : > { %v1404_v3 = vmul.f32 1.442695, %v1290_v51  ;;  %v1406_v48 = vmul.f32 1.442695, %v1291_v30  ;;  %v2097_v7 = vpop.f32.mrf.mxu2 }
 0x439   : > { %v2186_v59 = vpop.f32.mrf.mxu3 }
 0x43a   : > { %3217 = vpow2.f32 %v1404_v3  ;;  %v2187_v26 = vadd.f32 %v2186_v59, %v2097_v7 }
 0x43b   : > { %3219 = vpow2.f32 %v1406_v48  ;;  %v1537_v38 = vpop.xlane.xlu0 %1536  ;;  %v4804_v48 = vld [vmem:[#allocation41_spill] sm:$0xff] }
 0x43c   : > { %v1605_v18 = vadd.f32 %v1537_v38, %v1477_v27  ;;  %1836 = vperm.xlu2 %3050, %v4405_v34   ;;  %v4408_v21 = vadd.f32 %v2187_v26, %v1868_v54  ;;  %v1473_v7 = vmul.f32 %v4804_v48, %v1441_v41  ;;  %v4805_v26 = vld [vmem:[#allocation40_spill] sm:$0xff]  ;;  %v4807_v38 = vld [vmem:[#allocation43_spill] sm:$0xff] }
 0x43d   : > { %v1292_v62 = vsub.f32 %v4805_v26, %v4346_v5  ;;  %v2355_v5 = vld [vmem:[#allocation3 + $0x28] sm:$0xff] }
 0x43e   : > { %1638 = vst.msk [vmem:[#allocation3 + $0x68] sm:$0xff] %vm293_vm0, %v1605_v18 }
 0x440   : > { %v3218_v43 = vpop.eup %3217  ;;  %1539 = vadd.xlane.f32.xlu1 %v1538_v37  ;;  %v4808_v37 = vld [vmem:[#allocation42_spill] sm:$0xff] }
 0x441   : > { %v3220_v51 = vpop.eup %3219  ;;  %v1905_v8 = vpack.c.bf16 %v3218_v43, %v3206_v52  ;;  %v1408_v52 = vmul.f32 1.442695, %v1292_v62 }
 0x442   : > { %v1906_v30 = vpack.c.bf16 %v3220_v51, %v3208_v55  ;;  %v4415_v3 = vadd.f32 %v3220_v51, %v3218_v43  ;;  %v1410_v55 = vmul.f32 1.442695, %v1293_v24 }
 0x443   : > { %2109 = vmatmul.bf16.gmra.mxu2 %v1905_v8  ;;  %3221 = vpow2.f32 %v1408_v52  ;;  %v4439_v52 = vpop.permute.xlu1 %1811 }
 0x444   : > { %2198 = vmatmul.bf16.gmra.mxu3 %v1906_v30  ;;  %v4809_v30 = vld [vmem:[#allocation69_spill] sm:$0xff]  ;;  %3223 = vpow2.f32 %v1410_v55 }
 0x445   : > { %v1014_v41 = vsub.f32 %v4809_v30, %v4800_v32  ;;  %v4810_v55 = vld [vmem:[#allocation49_spill] sm:$0xff] }
 0x446   : > { %v1525_v59 = vpop.xlane.xlu2 %1524 }
 0x447   : > { %v1601_v54 = vadd.f32 %v1525_v59, %v1473_v7  ;;  %v1076_v48 = vmul.f32 1.442695, %v1014_v41 }
 0x449   : > { %1634 = vst.msk [vmem:[#allocation3 + $0x48] sm:$0xff] %vm293_vm0, %v1601_v54  ;;  %v4428_v7 = vpop.eup %3221 }
 0x44c   : > { %1554 = vadd.xlane.f32.xlu0 %v4288_v60  ;;  %v4430_v60 = vpop.eup %3223 }
 0x44e   : > { %v1218_v27 = vpop.permute.xlu2 %1217 }
 0x44f   : > { %v1294_v18 = vsub.f32 %v4807_v38, %v1218_v27  ;;  %v1295_v43 = vsub.f32 %v4808_v37, %v1218_v27  ;;  %v4445_v37 = vpop.permute.xlu0 %1831 }
 0x450   : > { %4811 = vst [vmem:[#allocation16_spill] sm:$0xff] %v4445_v37 }
 0x451   : > { %v1412_v51 = vmul.f32 1.442695, %v1294_v18  ;;  %v1414_v8 = vmul.f32 1.442695, %v1295_v43  ;;  %v2350_v43 = vld [vmem:[#allocation3] sm:$0xff] }
 0x453   : > { %3225 = vpow2.f32 %v1412_v51  ;;  %v1448_v51 = vld [vmem:[#allocation3 + $0x80] sm:$0xff] }
 0x454   : > { %3227 = vpow2.f32 %v1414_v8  ;;  %v4812_v8 = vld [vmem:[#allocation62_spill] sm:$0xff] }
 0x455   : > { %3229 = vrcp.f32 %v2355_v5  ;;  %v1480_v30 = vmul.f32 %v4812_v8, %v1448_v51  ;;  %v4813_v5 = vld [vmem:[#allocation52_spill] sm:$0xff] }
 0x456   : > { %3231 = vpow2.f32 %v1076_v48  ;;  %v4455_v8 = vpop.permute.xlu2 %1821 }
 0x457   : > { %3233 = vrcp.f32 %v2350_v43  ;;  %4817 = vst [vmem:[#allocation23_spill] sm:$0xff] %v4455_v8 }
 0x459   : > { %v3226_v59 = vpop.eup %3225  ;;  %1237 = vperm.xlu1 %3052, %v4213_v63   ;;  %v1443_v63 = vld [vmem:[#allocation3 + $0x58] sm:$0xff] }
 0x45a   : > { %v3228_v54 = vpop.eup %3227  ;;  %v1907_v26 = vpack.c.bf16 %v3226_v59, %v4428_v7  ;;  %v1475_v27 = vmul.f32 %v4810_v55, %v1443_v63  ;;  %v4815_v55 = vld [vmem:[#allocation48_spill] sm:$0xff] }
 0x45b   : > { %v1908_v62 = vpack.c.bf16 %v3228_v54, %v4430_v60  ;;  %v4435_v32 = vadd.f32 %v3228_v54, %v3226_v59  ;;  %v3230_v56 = vpop.eup %3229  ;;  %v1298_v59 = vsub.f32 %v4813_v5, %v4396_v49 }
 0x45c   : > { %2114 = vmatmul.bf16.gmra.mxu2 %v1907_v26  ;;  %v4437_v24 = vpop.eup %3231 }
 0x45d   : > { %2203 = vmatmul.bf16.gmra.mxu3 %v1908_v62  ;;  %v3234_v54 = vpop.eup %3233  ;;  %v1420_v62 = vmul.f32 1.442695, %v1298_v59 }
 0x45f   : > { %3235 = vpow2.f32 %v1420_v62  ;;  %v4819_v62 = vld [vmem:[#allocation55_spill] sm:$0xff] }
 0x460   : > { %2441 = vperm.xlu0 %3051, %v3230_v56  }
 0x461   : > { %1841 = vperm.xlu1 %3052, %v4437_v24  }
 0x465   : > { %1542 = vadd.xlane.f32.xlu2 %v4199_v53  ;;  %v4814_v53 = vld [vmem:[#allocation51_spill] sm:$0xff] }
 0x466   : > { %v1299_v26 = vsub.f32 %v4814_v53, %v4396_v49 }
 0x468   : > { %v1531_v38 = vpop.xlane.xlu1 %1530  ;;  %v1422_v56 = vmul.f32 1.442695, %v1299_v26 }
 0x469   : > { %v1603_v18 = vadd.f32 %v1531_v38, %v1475_v27  ;;  %v4816_v38 = vld [vmem:[#allocation47_spill] sm:$0xff] }
 0x46a   : > { %3237 = vpow2.f32 %v1422_v56 }
 0x46b   : > { %1636 = vst.msk [vmem:[#allocation3 + $0x58] sm:$0xff] %vm293_vm0, %v1603_v18 }
 0x479   : > { %v1546_v41 = vpop.xlane.xlu0 %1545 }
 0x47a   : > { %v1608_v48 = vadd.f32 %v1546_v41, %v1480_v30  ;;  %v4457_v30 = vpop.eup %3235 }
 0x47b   : > { %v4459_v49 = vpop.eup %3237 }
 0x47c   : > { %1641 = vst.msk [vmem:[#allocation3 + $0x80] sm:$0xff] %vm293_vm0, %v1608_v48  ;;  %v1444_v48 = vld [vmem:[#allocation3 + $0x60] sm:$0xff] }
 0x47d   : > { %2416 = vperm.xlu2 %3050, %v3234_v54   ;;  %v1476_v56 = vmul.f32 %v4819_v62, %v1444_v48  ;;  %v4824_v62 = vld [vmem:[#allocation54_spill] sm:$0xff] }
 0x480   : > { %v1223_v63 = vpop.permute.xlu1 %1222 }
 0x481   : > { %v1296_v27 = vsub.f32 %v4815_v55, %v1223_v63  ;;  %v1297_v18 = vsub.f32 %v4816_v38, %v1223_v63  ;;  %v4820_v63 = vld [vmem:[#allocation58_spill] sm:$0xff]  ;;  %v4821_v55 = vld [vmem:[#allocation59_spill] sm:$0xff] }
 0x483   : > { %v1416_v43 = vmul.f32 1.442695, %v1296_v27  ;;  %v1418_v51 = vmul.f32 1.442695, %v1297_v18 }
 0x485   : > { %3239 = vpow2.f32 %v1416_v43 }
 0x486   : > { %3241 = vpow2.f32 %v1418_v51 }
 0x48a   : > { %1563 = vadd.xlane.f32.xlu0 %v4361_v40  ;;  %v2145_v40 = vadd.f32 %v4821_v55, %v4820_v63  ;;  %v2351_v63 = vld [vmem:[#allocation3 + $0x8] sm:$0xff] }
 0x48b   : > { %v3240_v41 = vpop.eup %3239  ;;  %1548 = vadd.xlane.f32.xlu1 %v4202_v44  ;;  %v4822_v44 = vld [vmem:[#allocation35_spill] sm:$0xff] }
 0x48c   : > { %v3242_v5 = vpop.eup %3241  ;;  %v4463_v59 = vpop.permute.xlu0 %1846  ;;  %v1909_v54 = vpack.c.bf16 %v4457_v30, %v3240_v41  ;;  %v1851_v18 = vmul.f32 0.0, %v4822_v44 }
 0x48d   : > { %4818 = vst [vmem:[#allocation21_spill] sm:$0xff] %v4463_v59  ;;  %v1910_v53 = vpack.c.bf16 %v4459_v49, %v3242_v5  ;;  %v4467_v26 = vadd.f32 %v3242_v5, %v3240_v41  ;;  %v2358_v41 = vld [vmem:[#allocation3 + $0x40] sm:$0xff] }
 0x48e   : > { %2119 = vmatmul.bf16.gmra.mxu2 %v1909_v54  ;;  %v2221_v43 = vadd.f32 %v2145_v40, %v1851_v18  ;;  %3243 = vrcp.f32 %v2358_v41  ;;  %v4823_v54 = vld [vmem:[#allocation53_spill] sm:$0xff]  ;;  %v1446_v41 = vld [vmem:[#allocation3 + $0x70] sm:$0xff] }
 0x48f   : > { %2208 = vmatmul.bf16.gmra.mxu3 %v1910_v53  ;;  %v1534_v27 = vpop.xlane.xlu2 %1533  ;;  %3245 = vrcp.f32 %v2351_v63  ;;  %v4827_v59 = vld [vmem:[#allocation65_spill] sm:$0xff] }
 0x490   : > { %v1604_v38 = vadd.f32 %v1534_v27, %v1476_v56 }
 0x492   : > { %1637 = vst.msk [vmem:[#allocation3 + $0x60] sm:$0xff] %vm293_vm0, %v1604_v38 }
 0x494   : > { %v2427_v51 = vpop.permute.xlu0 %2426  ;;  %v3244_v40 = vpop.eup %3243 }
 0x495   : > { %v2576_v48 = vmul.f32 %v2427_v51, %v2221_v43  ;;  %v3246_v38 = vpop.eup %3245  ;;  %v4486_v51 = vpop.permute.xlu1 %1826 }
 0x497   : > { %2608 = vst [vmem:[%s4478_s29 + $0x10] sm:$0xff] %v2576_v48  ;;  %v1233_v5 = vpop.permute.xlu2 %1232  ;;  %v4825_v48 = vld [vmem:[#allocation66_spill] sm:$0xff] }
 0x498   : > { %v1300_v53 = vsub.f32 %v4823_v54, %v1233_v5  ;;  %v1301_v56 = vsub.f32 %v4824_v62, %v1233_v5  ;;  %v1478_v5 = vmul.f32 %v4825_v48, %v1446_v41  ;;  %v2353_v62 = vld [vmem:[#allocation3 + $0x18] sm:$0xff] }
 0x499   : > { %v4828_v48 = vld [vmem:[#allocation64_spill] sm:$0xff] }
 0x49a   : > { %v1424_v55 = vmul.f32 1.442695, %v1300_v53  ;;  %v1426_v27 = vmul.f32 1.442695, %v1301_v56  ;;  %v1451_v56 = vld [vmem:[#allocation3 + $0x98] sm:$0xff] }
 0x49c   : > { %3247 = vpow2.f32 %v1424_v55  ;;  %v4826_v55 = vld [vmem:[#allocation6_spill] sm:$0xff] }
 0x49d   : > { %3249 = vpow2.f32 %v1426_v27  ;;  %v1483_v27 = vmul.f32 %v4826_v55, %v1451_v56  ;;  %v4831_v55 = vld [vmem:[#allocation50_spill] sm:$0xff] }
 0x49e   : > { %2456 = vperm.xlu0 %3051, %v3244_v40   ;;  %3251 = vrcp.f32 %v2353_v62  ;;  %v4830_v62 = vld [vmem:[#allocation68_spill] sm:$0xff] }
 0x4a2   : > { %v3248_v44 = vpop.eup %3247 }
 0x4a3   : > { %v3250_v18 = vpop.eup %3249 }
 0x4a4   : > { %2421 = vperm.xlu1 %3052, %v3246_v38   ;;  %v4483_v43 = vadd.f32 %v3250_v18, %v3248_v44  ;;  %v3252_v63 = vpop.eup %3251 }
 0x4a6   : > { %1551 = vadd.xlane.f32.xlu2 %v4260_v35 }
 0x4b3   : > { %v1540_v54 = vpop.xlane.xlu1 %1539 }
 0x4b4   : > { %v1606_v53 = vadd.f32 %v1540_v54, %v1478_v5  ;;  %v1556_v54 = vadd.f32 %v4310_v46, %v4307_v14 }
 0x4b6   : > { %1639 = vst.msk [vmem:[#allocation3 + $0x70] sm:$0xff] %vm293_vm0, %v1606_v53  ;;  %v4829_v53 = vld [vmem:[#allocation67_spill] sm:$0xff] }
 0x4be   : > { %2431 = vperm.xlu2 %3050, %v3252_v63   ;;  %v2152_v63 = vadd.f32 %v4830_v62, %v4829_v53 }
 0x4bf   : > { %v1555_v40 = vpop.xlane.xlu0 %1554 }
 0x4c0   : > { %v1611_v38 = vadd.f32 %v1555_v40, %v1483_v27  ;;  %v1854_v27 = vmul.f32 0.0, %v4831_v55  ;;  %v4500_v40 = vpop.permute.xlu2 %1836 }
 0x4c2   : > { %1644 = vst.msk [vmem:[#allocation3 + $0x98] sm:$0xff] %vm293_vm0, %v1611_v38  ;;  %v2361_v38 = vld [vmem:[#allocation3 + $0x58] sm:$0xff] }
 0x4c8   : > { %1572 = vadd.xlane.f32.xlu0 %v4415_v3  ;;  %v2224_v3 = vadd.f32 %v2152_v63, %v1854_v27  ;;  %v2354_v63 = vld [vmem:[#allocation3 + $0x20] sm:$0xff] }
 0x4cb   : > { %v1238_v35 = vpop.permute.xlu1 %1237 }
 0x4cc   : > { %v1302_v41 = vsub.f32 %v4827_v59, %v1238_v35  ;;  %v1303_v5 = vsub.f32 %v4828_v48, %v1238_v35  ;;  %v1447_v35 = vld [vmem:[#allocation3 + $0x78] sm:$0xff]  ;;  %v4832_v48 = vld [vmem:[#allocation5_spill] sm:$0xff] }
 0x4ce   : > { %v1428_v8 = vmul.f32 1.442695, %v1302_v41  ;;  %v1430_v56 = vmul.f32 1.442695, %v1303_v5  ;;  %1557 = vadd.xlane.f32.xlu1 %v1556_v54  ;;  %v1479_v41 = vmul.f32 %v4832_v48, %v1447_v35 }
 0x4d0   : > { %3253 = vpow2.f32 %v1428_v8 }
 0x4d1   : > { %3255 = vpow2.f32 %v1430_v56  ;;  %v4833_v56 = vld [vmem:[#allocation44_spill] sm:$0xff] }
 0x4d2   : > { %v2442_v59 = vpop.permute.xlu0 %2441  ;;  %3257 = vrcp.f32 %v2361_v38  ;;  %v1449_v38 = vld [vmem:[#allocation3 + $0x88] sm:$0xff] }
 0x4d3   : > { %v2579_v37 = vmul.f32 %v2442_v59, %v2224_v3  ;;  %3259 = vrcp.f32 %v2354_v63  ;;  %v1454_v59 = vld [vmem:[#allocation3 + $0xb0] sm:$0xff] }
 0x4d4   : > { %v1486_v35 = vmul.f32 %v4219_v6, %v1454_v59  ;;  %v4837_v63 = vld [vmem:[#allocation7_spill] sm:$0xff]  ;;  %v4839_v59 = vld [vmem:[#allocation57_spill] sm:$0xff] }
 0x4d5   : > { %2611 = vst [vmem:[%s4478_s29 + $0x28] sm:$0xff] %v2579_v37  ;;  %v1857_v6 = vmul.f32 0.0, %v4837_v63  ;;  %v4843_v63 = vld [vmem:[#allocation34_spill] sm:$0xff] }
 0x4d6   : > { %v3254_v14 = vpop.eup %3253 }
 0x4d7   : > { %v3256_v46 = vpop.eup %3255  ;;  %v1911_v5 = vpack.c.bf16 %v3254_v14, %v3248_v44  ;;  %v2356_v44 = vld [vmem:[#allocation3 + $0x30] sm:$0xff] }
 0x4d8   : > { %v1543_v54 = vpop.xlane.xlu2 %1542  ;;  %v1912_v53 = vpack.c.bf16 %v3256_v46, %v3250_v18  ;;  %v4504_v62 = vadd.f32 %v3256_v46, %v3254_v14  ;;  %v3258_v8 = vpop.eup %3257  ;;  %3261 = vrcp.f32 %v2356_v44  ;;  %v4834_v46 = vld [vmem:[#allocation71_spill] sm:$0xff]  ;;  %v4838_v44 = vld [vmem:[#allocation56_spill] sm:$0xff] }
 0x4d9   : > { %v1607_v55 = vadd.f32 %v1543_v54, %v1479_v41  ;;  %2124 = vmatmul.bf16.gmra.mxu2 %v1911_v5  ;;  %v3260_v3 = vpop.eup %3259  ;;  %v4510_v18 = vpop.permute.xlu1 %1841  ;;  %v1481_v48 = vmul.f32 %v4834_v46, %v1449_v38  ;;  %v2142_v38 = vadd.f32 %v4839_v59, %v4838_v44  ;;  %v2359_v44 = vld [vmem:[#allocation3 + $0x48] sm:$0xff] }
 0x4da   : > { %2213 = vmatmul.bf16.gmra.mxu3 %v1912_v53  ;;  %v1457_v59 = vld [vmem:[#allocation3 + $0xc8] sm:$0xff] }
 0x4db   : > { %1640 = vst.msk [vmem:[#allocation3 + $0x78] sm:$0xff] %vm293_vm0, %v1607_v55  ;;  %v4836_v55 = vld [vmem:[#allocation8_spill] sm:$0xff] }
 0x4dc   : > { %2471 = vperm.xlu0 %3051, %v3258_v8  }
 0x4de   : > { %v3262_v41 = vpop.eup %3261 }
 0x4e0   : > { %v2417_v37 = vpop.permute.xlu2 %2416 }
 0x4e1   : > { %v2574_v27 = vmul.f32 %v2417_v37, %v4833_v56  ;;  %v1565_v56 = vadd.f32 %v4353_v23, %v4350_v9 }
 0x4e3   : > { %2606 = vst [vmem:[%s4478_s29] sm:$0xff] %v2574_v27 }
 0x4e7   : > { %1560 = vadd.xlane.f32.xlu2 %v4317_v0  ;;  %2436 = vperm.xlu1 %3052, %v3260_v3   ;;  %v4835_v0 = vld [vmem:[#allocation14_spill] sm:$0xff]  ;;  %v2364_v3 = vld [vmem:[#allocation3 + $0x70] sm:$0xff] }
 0x4e8   : > { %v2160_v8 = vadd.f32 %v4836_v55, %v4835_v0  ;;  %3263 = vrcp.f32 %v2364_v3  ;;  %v4841_v0 = vld [vmem:[#allocation60_spill] sm:$0xff]  ;;  %v4842_v55 = vld [vmem:[#allocation61_spill] sm:$0xff] }
 0x4ea   : > { %v2227_v37 = vadd.f32 %v2160_v8, %v1857_v6  ;;  %v2147_v8 = vadd.f32 %v4842_v55, %v4841_v0  ;;  %v1852_v6 = vmul.f32 0.0, %v4843_v63 }
 0x4fd   : > { %v1564_v14 = vpop.xlane.xlu0 %1563 }
 0x4fe   : > { %v1614_v5 = vadd.f32 %v1564_v14, %v1486_v35  ;;  %v1549_v54 = vpop.xlane.xlu1 %1548  ;;  %v4840_v14 = vld [vmem:[#allocation30_spill] sm:$0xff] }
 0x4ff   : > { %v1609_v53 = vadd.f32 %v1549_v54, %v1481_v48  ;;  %2446 = vperm.xlu2 %3050, %v3262_v41   ;;  %v1850_v46 = vmul.f32 0.0, %v4840_v14  ;;  %v1450_v48 = vld [vmem:[#allocation3 + $0x90] sm:$0xff] }
 0x500   : > { %1647 = vst.msk [vmem:[#allocation3 + $0xb0] sm:$0xff] %vm293_vm0, %v1614_v5  ;;  %v1482_v54 = vmul.f32 %v4187_v28, %v1450_v48 }
 0x501   : > { %1642 = vst.msk [vmem:[#allocation3 + $0x88] sm:$0xff] %vm293_vm0, %v1609_v53  ;;  %v3264_v53 = vpop.eup %3263 }
 0x506   : > { %1581 = vadd.xlane.f32.xlu0 %v4467_v26  ;;  %v2220_v26 = vadd.f32 %v2142_v38, %v1850_v46  ;;  %v1489_v38 = vmul.f32 %v4268_v10, %v1457_v59  ;;  %v1452_v46 = vld [vmem:[#allocation3 + $0xa0] sm:$0xff]  ;;  %v4845_v10 = vld [vmem:[#allocation72_spill] sm:$0xff]  ;;  %v2360_v59 = vld [vmem:[#allocation3 + $0x50] sm:$0xff] }
 0x507   : > { %v1484_v48 = vmul.f32 %v4229_v50, %v1452_v46  ;;  %v1574_v50 = vadd.f32 %v4430_v60, %v4428_v7  ;;  %v4847_v60 = vld [vmem:[#allocation25_spill] sm:$0xff] }
 0x508   : > { %v2367_v0 = vld [vmem:[#allocation3 + $0x88] sm:$0xff] }
 0x510   : > { %v2457_v27 = vpop.permute.xlu0 %2456 }
 0x511   : > { %v2582_v35 = vmul.f32 %v2457_v27, %v2227_v37  ;;  %1566 = vadd.xlane.f32.xlu1 %v1565_v56  ;;  %v2222_v37 = vadd.f32 %v2147_v8, %v1852_v6  ;;  %v2357_v56 = vld [vmem:[#allocation3 + $0x38] sm:$0xff]  ;;  %v1453_v8 = vld [vmem:[#allocation3 + $0xa8] sm:$0xff] }
 0x512   : > { %3265 = vrcp.f32 %v2357_v56 }
 0x513   : > { %2614 = vst [vmem:[%s4478_s29 + $0x40] sm:$0xff] %v2582_v35  ;;  %3267 = vrcp.f32 %v2359_v44 }
 0x514   : > { %3269 = vrcp.f32 %v2367_v0 }
 0x516   : > { %v2422_v41 = vpop.permute.xlu1 %2421 }
 0x517   : > { %v2575_v5 = vmul.f32 %v2422_v41, %v2220_v26 }
 0x518   : > { %v3266_v28 = vpop.eup %3265 }
 0x519   : > { %2607 = vst [vmem:[%s4478_s29 + $0x8] sm:$0xff] %v2575_v5  ;;  %v1552_v9 = vpop.xlane.xlu2 %1551  ;;  %v3268_v26 = vpop.eup %3267 }
 0x51a   : > { %v1610_v23 = vadd.f32 %v1552_v9, %v1482_v54  ;;  %2486 = vperm.xlu0 %3051, %v3264_v53   ;;  %v1860_v53 = vmul.f32 0.0, %v4845_v10  ;;  %v4848_v10 = vld [vmem:[#allocation11_spill] sm:$0xff] }
 0x51c   : > { %1643 = vst.msk [vmem:[#allocation3 + $0x90] sm:$0xff] %vm293_vm0, %v1610_v23 }
 0x521   : > { %v2432_v27 = vpop.permute.xlu2 %2431 }
 0x522   : > { %v2577_v3 = vmul.f32 %v2432_v27, %v2222_v37  ;;  %v4846_v37 = vld [vmem:[#allocation63_spill] sm:$0xff] }
 0x524   : > { %2609 = vst [vmem:[%s4478_s29 + $0x18] sm:$0xff] %v2577_v3 }
 0x528   : > { %1569 = vadd.xlane.f32.xlu2 %v4374_v36  ;;  %v4844_v36 = vld [vmem:[#allocation15_spill] sm:$0xff] }
 0x529   : > { %v2167_v54 = vadd.f32 %v4844_v36, %v4238_v31  ;;  %v1485_v31 = vmul.f32 %v4252_v11, %v1453_v8  ;;  %v1460_v11 = vld [vmem:[#allocation3 + $0xe0] sm:$0xff] }
 0x52a   : > { %2451 = vperm.xlu1 %3052, %v3266_v28   ;;  %v4850_v8 = vld [vmem:[#allocation13_spill] sm:$0xff] }
 0x52b   : > { %v2230_v9 = vadd.f32 %v2167_v54, %v1860_v53 }
 0x53b   : > { %v1573_v35 = vpop.xlane.xlu0 %1572 }
 0x53c   : > { %v1617_v14 = vadd.f32 %v1573_v35, %v1489_v38  ;;  %v2362_v35 = vld [vmem:[#allocation3 + $0x60] sm:$0xff] }
 0x53e   : > { %1650 = vst.msk [vmem:[#allocation3 + $0xc8] sm:$0xff] %vm293_vm0, %v1617_v14  ;;  %v1492_v14 = vmul.f32 %v4332_v45, %v1460_v11  ;;  %v1863_v45 = vmul.f32 0.0, %v4848_v10  ;;  %v1866_v10 = vmul.f32 0.0, %v4286_v39 }
 0x540   : > { %2461 = vperm.xlu2 %3050, %v3268_v26  }
 0x541   : > { %v1558_v41 = vpop.xlane.xlu1 %1557 }
 0x542   : > { %v1612_v5 = vadd.f32 %v1558_v41, %v1484_v48  ;;  %v1455_v41 = vld [vmem:[#allocation3 + $0xb8] sm:$0xff] }
 0x544   : > { %1645 = vst.msk [vmem:[#allocation3 + $0xa0] sm:$0xff] %vm293_vm0, %v1612_v5  ;;  %1590 = vadd.xlane.f32.xlu0 %v4504_v62  ;;  %v3270_v62 = vpop.eup %3269  ;;  %v1487_v5 = vmul.f32 %v4283_v16, %v1455_v41  ;;  %v1583_v16 = vadd.f32 %v4459_v49, %v4457_v30  ;;  %v4852_v49 = vld [vmem:[#allocation9_spill] sm:$0xff] }
 0x54b   : > { %v2370_v63 = vld [vmem:[#allocation3 + $0xa0] sm:$0xff] }
 0x54c   : > { %3271 = vrcp.f32 %v2370_v63  ;;  %v4851_v63 = vld [vmem:[#allocation46_spill] sm:$0xff] }
 0x54d   : > { %3273 = vrcp.f32 %v2360_v59 }
 0x54e   : > { %v2472_v23 = vpop.permute.xlu0 %2471  ;;  %3275 = vrcp.f32 %v2362_v35 }
 0x54f   : > { %v2585_v55 = vmul.f32 %v2472_v23, %v2230_v9 }
 0x551   : > { %2617 = vst [vmem:[%s4478_s29 + $0x58] sm:$0xff] %v2585_v55 }
 0x552   : > { %v3272_v28 = vpop.eup %3271 }
 0x553   : > { %v3274_v38 = vpop.eup %3273 }
 0x554   : > { %1575 = vadd.xlane.f32.xlu1 %v1574_v50  ;;  %v3276_v48 = vpop.eup %3275  ;;  %v4849_v50 = vld [vmem:[#allocation12_spill] sm:$0xff] }
 0x558   : > { %2501 = vperm.xlu0 %3051, %v3270_v62   ;;  %v1856_v62 = vmul.f32 0.0, %v4851_v63 }
 0x559   : > { %v2437_v6 = vpop.permute.xlu1 %2436 }
 0x55a   : > { %v2578_v56 = vmul.f32 %v2437_v6, %v4846_v37  ;;  %v1561_v27 = vpop.xlane.xlu2 %1560 }
 0x55b   : > { %v1613_v3 = vadd.f32 %v1561_v27, %v1485_v31 }
 0x55c   : > { %2610 = vst [vmem:[%s4478_s29 + $0x20] sm:$0xff] %v2578_v56 }
 0x55d   : > { %1646 = vst.msk [vmem:[#allocation3 + $0xa8] sm:$0xff] %vm293_vm0, %v1613_v3 }
 0x560   : > { %2516 = vperm.xlu0 %3051, %v3272_v28  }
 0x562   : > { %v2447_v7 = vpop.permute.xlu2 %2446 }
 0x563   : > { %v2580_v44 = vmul.f32 %v2447_v7, %v4847_v60  ;;  %v2363_v7 = vld [vmem:[#allocation3 + $0x68] sm:$0xff]  ;;  %v2366_v60 = vld [vmem:[#allocation3 + $0x80] sm:$0xff] }
 0x565   : > { %2612 = vst [vmem:[%s4478_s29 + $0x30] sm:$0xff] %v2580_v44 }
 0x569   : > { %1578 = vadd.xlane.f32.xlu2 %v4435_v32  ;;  %v2175_v32 = vadd.f32 %v4302_v25, %v4298_v57  ;;  %v2157_v57 = vadd.f32 %v4850_v8, %v4849_v50  ;;  %v1456_v25 = vld [vmem:[#allocation3 + $0xc0] sm:$0xff]  ;;  %v1869_v8 = vmul.f32 0.0, %v4356_v2 }
 0x56a   : > { %v1488_v6 = vmul.f32 %v4319_v1, %v1456_v25  ;;  %v1463_v1 = vld [vmem:[#allocation3 + $0xf8] sm:$0xff] }
 0x56b   : > { %v2233_v53 = vadd.f32 %v2175_v32, %v1863_v45  ;;  %v2226_v37 = vadd.f32 %v2157_v57, %v1856_v62  ;;  %v1495_v59 = vmul.f32 %v4381_v61, %v1463_v1  ;;  %v2182_v61 = vadd.f32 %v4389_v22, %v4387_v47 }
 0x56d   : > { %2466 = vperm.xlu1 %3052, %v3274_v38   ;;  %v2369_v38 = vld [vmem:[#allocation3 + $0x98] sm:$0xff] }
 0x579   : > { %v1582_v46 = vpop.xlane.xlu0 %1581 }
 0x57a   : > { %v1620_v26 = vadd.f32 %v1582_v46, %v1492_v14  ;;  %v2365_v46 = vld [vmem:[#allocation3 + $0x78] sm:$0xff] }
 0x57c   : > { %1653 = vst.msk [vmem:[#allocation3 + $0xe0] sm:$0xff] %vm293_vm0, %v1620_v26  ;;  %v2372_v26 = vld [vmem:[#allocation3 + $0xb0] sm:$0xff] }
 0x581   : > { %2476 = vperm.xlu2 %3050, %v3276_v48  }
 0x583   : > { %v2378_v39 = vld [vmem:[#allocation3 + $0xe0] sm:$0xff] }
 0x584   : > { %v1567_v36 = vpop.xlane.xlu1 %1566 }
 0x585   : > { %v1615_v54 = vadd.f32 %v1567_v36, %v1487_v5  ;;  %v1458_v5 = vld [vmem:[#allocation3 + $0xd0] sm:$0xff] }
 0x586   : > { %v1490_v36 = vmul.f32 %v4348_v12, %v1458_v5  ;;  %v1872_v5 = vmul.f32 0.0, %v4410_v15 }
 0x587   : > { %1648 = vst.msk [vmem:[#allocation3 + $0xb8] sm:$0xff] %vm293_vm0, %v1615_v54  ;;  %v2375_v54 = vld [vmem:[#allocation3 + $0xc8] sm:$0xff] }
 0x58c   : > { %v2487_v9 = vpop.permute.xlu0 %2486 }
 0x58d   : > { %v2588_v23 = vmul.f32 %v2487_v9, %v2233_v53  ;;  %v2371_v9 = vld [vmem:[#allocation3 + $0xa8] sm:$0xff] }
 0x58e   : > { %v2373_v0 = vld [vmem:[#allocation3 + $0xb8] sm:$0xff] }
 0x58f   : > { %2620 = vst [vmem:[%s4478_s29 + $0x70] sm:$0xff] %v2588_v23  ;;  %3277 = vrcp.f32 %v2373_v0  ;;  %v2100_v0 = vpop.f32.mrf.mxu2 }
 0x590   : > { %3279 = vrcp.f32 %v2363_v7 }
 0x591   : > { %3281 = vrcp.f32 %v2366_v60 }
 0x592   : > { %3283 = vrcp.f32 %v2369_v38 }
 0x593   : > { %3285 = vrcp.f32 %v2365_v46 }
 0x594   : > { %3287 = vrcp.f32 %v2372_v26 }
 0x595   : > { %v3278_v55 = vpop.eup %3277 }
 0x596   : > { %2531 = vperm.xlu0 %3051, %v3278_v55   ;;  %v3280_v44 = vpop.eup %3279  ;;  %v2236_v55 = vadd.f32 %v2182_v61, %v1866_v10  ;;  %v1461_v61 = vld [vmem:[#allocation3 + $0xe8] sm:$0xff] }
 0x597   : > { %1584 = vadd.xlane.f32.xlu1 %v1583_v16  ;;  %v3282_v11 = vpop.eup %3281  ;;  %v2189_v16 = vpop.f32.mrf.mxu3  ;;  %v1493_v10 = vmul.f32 %v4405_v34, %v1461_v61 }
 0x598   : > { %v3284_v48 = vpop.eup %3283  ;;  %v2190_v12 = vadd.f32 %v2189_v16, %v2100_v0  ;;  %v1462_v16 = vld [vmem:[#allocation3 + $0xf0] sm:$0xff] }
 0x599   : > { %v3286_v41 = vpop.eup %3285 }
 0x59a   : > { %v3288_v32 = vpop.eup %3287  ;;  %v2239_v63 = vadd.f32 %v2190_v12, %v1869_v8  ;;  %v1494_v12 = vmul.f32 %v4437_v24, %v1462_v16 }
 0x59b   : > { %v1570_v31 = vpop.xlane.xlu2 %1569 }
 0x59c   : > { %v1616_v56 = vadd.f32 %v1570_v31, %v1488_v6  ;;  %v2452_v27 = vpop.permute.xlu1 %2451 }
 0x59d   : > { %v2581_v3 = vmul.f32 %v2452_v27, %v2226_v37 }
 0x59e   : > { %1649 = vst.msk [vmem:[#allocation3 + $0xc0] sm:$0xff] %vm293_vm0, %v1616_v56 }
 0x59f   : > { %2613 = vst [vmem:[%s4478_s29 + $0x38] sm:$0xff] %v2581_v3  ;;  %v1459_v3 = vld [vmem:[#allocation3 + $0xd8] sm:$0xff]  ;;  %v2191_v46 = vpop.f32.mrf.mxu3 }
 0x5a0   : > { %v1491_v2 = vmul.f32 %v4376_v4, %v1459_v3 }
 0x5a3   : > { %v2462_v30 = vpop.permute.xlu2 %2461 }
 0x5a4   : > { %v2583_v28 = vmul.f32 %v2462_v30, %v4852_v49 }
 0x5a5   : > { %v2374_v57 = vld [vmem:[#allocation3 + $0xc0] sm:$0xff] }
 0x5a6   : > { %2615 = vst [vmem:[%s4478_s29 + $0x48] sm:$0xff] %v2583_v28 }
 0x5a7   : > { %v2194_v26 = vpop.f32.mrf.mxu3 }
 0x5aa   : > { %1587 = vadd.xlane.f32.xlu2 %v4483_v43  ;;  %v2368_v43 = vld [vmem:[#allocation3 + $0x90] sm:$0xff] }
 0x5ab   : > { %3289 = vrcp.f32 %v2368_v43 }
 0x5ac   : > { %3291 = vrcp.f32 %v2375_v54 }
 0x5ad   : > { %3293 = vrcp.f32 %v2371_v9 }
 0x5ae   : > { %3295 = vrcp.f32 %v2378_v39 }
 0x5af   : > { %v2196_v43 = vpop.f32.mrf.mxu3 }
 0x5b0   : > { %2481 = vperm.xlu1 %3052, %v3280_v44   ;;  %v4853_v44 = vld [vmem:[#allocation10_spill] sm:$0xff] }
 0x5b1   : > { %v3290_v23 = vpop.eup %3289 }
 0x5b2   : > { %v3292_v50 = vpop.eup %3291 }
 0x5b3   : > { %v3294_v25 = vpop.eup %3293 }
 0x5b4   : > { %v3296_v56 = vpop.eup %3295 }
 0x5b7   : > { %v1591_v35 = vpop.xlane.xlu0 %1590 }
 0x5b8   : > { %v1623_v14 = vadd.f32 %v1591_v35, %v1495_v59  ;;  %2496 = vperm.xlu1 %3052, %v3282_v11  }
 0x5ba   : > { %1656 = vst.msk [vmem:[#allocation3 + $0xf8] sm:$0xff] %vm293_vm0, %v1623_v14  ;;  %v2102_v14 = vpop.f32.mrf.mxu2 }
 0x5c0   : > { %2511 = vperm.xlu1 %3052, %v3284_v48  }
 0x5c1   : > { %v2381_v37 = vld [vmem:[#allocation3 + $0xf8] sm:$0xff] }
 0x5c2   : > { %2491 = vperm.xlu2 %3050, %v3286_v41   ;;  %v2105_v4 = vpop.f32.mrf.mxu2 }
 0x5c7   : > { %v1576_v45 = vpop.xlane.xlu1 %1575 }
 0x5c8   : > { %v1618_v53 = vadd.f32 %v1576_v45, %v1490_v36  ;;  %2526 = vperm.xlu1 %3052, %v3288_v32   ;;  %v2199_v45 = vpop.f32.mrf.mxu3 }
 0x5ca   : > { %1651 = vst.msk [vmem:[#allocation3 + $0xd0] sm:$0xff] %vm293_vm0, %v1618_v53  ;;  %2506 = vperm.xlu2 %3050, %v3290_v23   ;;  %v2502_v47 = vpop.permute.xlu0 %2501  ;;  %v2107_v48 = vpop.f32.mrf.mxu2 }
 0x5cb   : > { %v2591_v22 = vmul.f32 %v2502_v47, %v2236_v55  ;;  %v2197_v41 = vadd.f32 %v2196_v43, %v2107_v48 }
 0x5cd   : > { %2623 = vst [vmem:[%s4478_s29 + $0x88] sm:$0xff] %v2591_v22  ;;  %v2242_v36 = vadd.f32 %v2197_v41, %v1872_v5 }
 0x5d0   : > { %2541 = vperm.xlu1 %3052, %v3292_v50   ;;  %v2201_v0 = vpop.f32.mrf.mxu3 }
 0x5d1   : > { %v2376_v62 = vld [vmem:[#allocation3 + $0xd0] sm:$0xff] }
 0x5d2   : > { %2521 = vperm.xlu2 %3050, %v3294_v25   ;;  %v2517_v6 = vpop.permute.xlu0 %2516  ;;  %3297 = vrcp.f32 %v2376_v62  ;;  %v2110_v32 = vpop.f32.mrf.mxu2 }
 0x5d3   : > { %v2594_v31 = vmul.f32 %v2517_v6, %v2239_v63  ;;  %3299 = vrcp.f32 %v2374_v57 }
 0x5d4   : > { %3301 = vrcp.f32 %v2381_v37 }
 0x5d5   : > { %2626 = vst [vmem:[%s4478_s29 + $0xa0] sm:$0xff] %v2594_v31 }
 0x5d8   : > { %v3298_v27 = vpop.eup %3297  ;;  %2556 = vperm.xlu1 %3052, %v3296_v56   ;;  %v2204_v22 = vpop.f32.mrf.mxu3 }
 0x5d9   : > { %v3300_v30 = vpop.eup %3299  ;;  %2546 = vperm.xlu0 %3051, %v3298_v27  }
 0x5da   : > { %2536 = vperm.xlu2 %3050, %v3300_v30   ;;  %v3302_v7 = vpop.eup %3301  ;;  %v2112_v23 = vpop.f32.mrf.mxu2  ;;  %v2192_v30 = vadd.f32 %v2191_v46, %v2102_v14 }
 0x5db   : > { %v2202_v14 = vadd.f32 %v2201_v0, %v2112_v23 }
 0x5dc   : > { %v1579_v49 = vpop.xlane.xlu2 %1578 }
 0x5dd   : > { %v1619_v28 = vadd.f32 %v1579_v49, %v1491_v2 }
 0x5df   : > { %1652 = vst.msk [vmem:[#allocation3 + $0xd8] sm:$0xff] %vm293_vm0, %v1619_v28  ;;  %v2467_v60 = vpop.permute.xlu1 %2466 }
 0x5e0   : > { %v2584_v1 = vmul.f32 %v2467_v60, %v4853_v44  ;;  %2571 = vperm.xlu1 %3052, %v3302_v7   ;;  %v2206_v63 = vpop.f32.mrf.mxu3  ;;  %v2195_v7 = vadd.f32 %v2194_v26, %v2105_v4  ;;  %v1871_v44 = vmul.f32 0.0, %v4335_v33  ;;  %v1874_v26 = vmul.f32 0.0, %v4391_v13 }
 0x5e2   : > { %2616 = vst [vmem:[%s4478_s29 + $0x50] sm:$0xff] %v2584_v1  ;;  %v2115_v47 = vpop.f32.mrf.mxu2  ;;  %v2244_v43 = vadd.f32 %v2202_v14, %v1874_v26 }
 0x5e4   : > { %v2477_v59 = vpop.permute.xlu2 %2476 }
 0x5e5   : > { %v2586_v38 = vmul.f32 %v2477_v59, %v4249_v19 }
 0x5e6   : > { %v2377_v11 = vld [vmem:[#allocation3 + $0xd8] sm:$0xff] }
 0x5e7   : > { %2618 = vst [vmem:[%s4478_s29 + $0x60] sm:$0xff] %v2586_v38  ;;  %3303 = vrcp.f32 %v2377_v11  ;;  %v2241_v38 = vadd.f32 %v2195_v7, %v1871_v44  ;;  %v1873_v11 = vmul.f32 0.0, %v4439_v52  ;;  %v1876_v52 = vmul.f32 0.0, %v4486_v51 }
 0x5e8   : > { %v2209_v3 = vpop.f32.mrf.mxu3 }
 0x5ea   : > { %v2117_v57 = vpop.f32.mrf.mxu2 }
 0x5eb   : > { %v2207_v5 = vadd.f32 %v2206_v63, %v2117_v57  ;;  %v1879_v63 = vmul.f32 0.0, %v4510_v18 }
 0x5ed   : > { %v3304_v35 = vpop.eup %3303 }
 0x5ee   : > { %2551 = vperm.xlu2 %3050, %v3304_v35  }
 0x5f0   : > { %v2211_v59 = vpop.f32.mrf.mxu3 }
 0x5f2   : > { %v2120_v37 = vpop.f32.mrf.mxu2 }
 0x5f8   : > { %v2214_v33 = vpop.f32.mrf.mxu3 }
 0x5fa   : > { %v2122_v1 = vpop.f32.mrf.mxu2 }
 0x602   : > { %v2125_v48 = vpop.f32.mrf.mxu2 }
 0x608   : > { %v2532_v54 = vpop.permute.xlu0 %2531 }
 0x609   : > { %v2597_v19 = vmul.f32 %v2532_v54, %v2242_v36  ;;  %v2210_v36 = vadd.f32 %v2209_v3, %v2120_v37  ;;  %v2205_v54 = vadd.f32 %v2204_v22, %v2115_v47  ;;  %v4856_v22 = vld [vmem:[#allocation21_spill] sm:$0xff]  ;;  %v1878_v37 = vmul.f32 0.0, %v4500_v40 }
 0x60a   : > { %v1585_v53 = vpop.xlane.xlu1 %1584 }
 0x60b   : > { %2629 = vst [vmem:[%s4478_s29 + $0xb8] sm:$0xff] %v2597_v19  ;;  %v1621_v9 = vadd.f32 %v1585_v53, %v1493_v10  ;;  %v2246_v10 = vadd.f32 %v2207_v5, %v1876_v52 }
 0x60d   : > { %1654 = vst.msk [vmem:[#allocation3 + $0xe8] sm:$0xff] %vm293_vm0, %v1621_v9  ;;  %v2127_v9 = vpop.f32.mrf.mxu2 }
 0x614   : > { %v2379_v55 = vld [vmem:[#allocation3 + $0xe8] sm:$0xff] }
 0x615   : > { %3305 = vrcp.f32 %v2379_v55  ;;  %v2216_v55 = vpop.f32.mrf.mxu3 }
 0x616   : > { %v2217_v47 = vadd.f32 %v2216_v55, %v2127_v9 }
 0x61b   : > { %v3306_v15 = vpop.eup %3305 }
 0x61c   : > { %2561 = vperm.xlu0 %3051, %v3306_v15  }
 0x61d   : > { %v1588_v34 = vpop.xlane.xlu2 %1587 }
 0x61e   : > { %v1622_v39 = vadd.f32 %v1588_v34, %v1494_v12 }
 0x620   : > { %1655 = vst.msk [vmem:[#allocation3 + $0xf0] sm:$0xff] %vm293_vm0, %v1622_v39  ;;  %v1880_v39 = vmul.f32 0.0, %v4856_v22 }
 0x622   : > { %v2482_v50 = vpop.permute.xlu1 %2481 }
 0x623   : > { %v2587_v8 = vmul.f32 %v2482_v50, %v4257_v17  ;;  %v2250_v50 = vadd.f32 %v2217_v47, %v1880_v39 }
 0x625   : > { %2619 = vst [vmem:[%s4478_s29 + $0x68] sm:$0xff] %v2587_v8  ;;  %v2492_v25 = vpop.permute.xlu2 %2491 }
 0x626   : > { %v2589_v62 = vmul.f32 %v2492_v25, %v4312_v42  ;;  %v1870_v42 = vmul.f32 0.0, %v4378_v20  ;;  %v2215_v25 = vadd.f32 %v2214_v33, %v2125_v48 }
 0x627   : > { %v2380_v6 = vld [vmem:[#allocation3 + $0xf0] sm:$0xff] }
 0x628   : > { %2621 = vst [vmem:[%s4478_s29 + $0x78] sm:$0xff] %v2589_v62  ;;  %3307 = vrcp.f32 %v2380_v6  ;;  %v2240_v28 = vadd.f32 %v2192_v30, %v1870_v42  ;;  %v2249_v62 = vadd.f32 %v2215_v25, %v1879_v63  ;;  %v2212_v6 = vadd.f32 %v2211_v59, %v2122_v1 }
 0x62a   : > { %v2497_v31 = vpop.permute.xlu1 %2496 }
 0x62b   : > { %v2590_v24 = vmul.f32 %v2497_v31, %v4327_v29 }
 0x62d   : > { %2622 = vst [vmem:[%s4478_s29 + $0x80] sm:$0xff] %v2590_v24  ;;  %v2507_v56 = vpop.permute.xlu2 %2506 }
 0x62e   : > { %v3308_v27 = vpop.eup %3307  ;;  %v2592_v17 = vmul.f32 %v2507_v56, %v4399_v58  ;;  %v2200_v58 = vadd.f32 %v2199_v45, %v2110_v32  ;;  %v4854_v32 = vld [vmem:[#allocation16_spill] sm:$0xff]  ;;  %v4855_v45 = vld [vmem:[#allocation23_spill] sm:$0xff]  ;;  %v2248_v56 = vadd.f32 %v2212_v6, %v1878_v37 }
 0x62f   : > { %2566 = vperm.xlu2 %3050, %v3308_v27   ;;  %v1877_v19 = vmul.f32 0.0, %v4854_v32  ;;  %v1875_v13 = vmul.f32 0.0, %v4855_v45 }
 0x630   : > { %2624 = vst [vmem:[%s4478_s29 + $0x90] sm:$0xff] %v2592_v17 }
 0x631   : > { %v2247_v0 = vadd.f32 %v2210_v36, %v1877_v19  ;;  %v2245_v15 = vadd.f32 %v2205_v54, %v1875_v13 }
 0x632   : > { %v2512_v2 = vpop.permute.xlu1 %2511 }
 0x633   : > { %v2593_v49 = vmul.f32 %v2512_v2, %v4408_v21  ;;  %v2243_v21 = vadd.f32 %v2200_v58, %v1873_v11 }
 0x635   : > { %2625 = vst [vmem:[%s4478_s29 + $0x98] sm:$0xff] %v2593_v49  ;;  %v2522_v29 = vpop.permute.xlu2 %2521 }
 0x636   : > { %v2595_v60 = vmul.f32 %v2522_v29, %v2240_v28 }
 0x638   : > { %2627 = vst [vmem:[%s4478_s29 + $0xa8] sm:$0xff] %v2595_v60 }
 0x63a   : > { %v2527_v20 = vpop.permute.xlu1 %2526 }
 0x63b   : > { %v2596_v35 = vmul.f32 %v2527_v20, %v2241_v38 }
 0x63d   : > { %2628 = vst [vmem:[%s4478_s29 + $0xb0] sm:$0xff] %v2596_v35  ;;  %v2537_v46 = vpop.permute.xlu2 %2536 }
 0x63e   : > { %v2598_v4 = vmul.f32 %v2537_v46, %v2243_v21 }
 0x640   : > { %2630 = vst [vmem:[%s4478_s29 + $0xc0] sm:$0xff] %v2598_v4 }
 0x642   : > { %v2542_v41 = vpop.permute.xlu1 %2541 }
 0x643   : > { %v2599_v61 = vmul.f32 %v2542_v41, %v2244_v43 }
 0x645   : > { %2631 = vst [vmem:[%s4478_s29 + $0xc8] sm:$0xff] %v2599_v61 }
 0x648   : > { %v2552_v53 = vpop.permute.xlu2 %2551 }
 0x649   : > { %v2601_v23 = vmul.f32 %v2552_v53, %v2246_v10 }
 0x64a   : > { %v2557_v16 = vpop.permute.xlu1 %2556 }
 0x64b   : > { %2633 = vst [vmem:[%s4478_s29 + $0xd8] sm:$0xff] %v2601_v23  ;;  %v2602_v51 = vmul.f32 %v2557_v16, %v2247_v0  ;;  %v2547_v12 = vpop.permute.xlu0 %2546 }
 0x64c   : > { %v2600_v34 = vmul.f32 %v2547_v12, %v2245_v15 }
 0x64d   : > { %2634 = vst [vmem:[%s4478_s29 + $0xe0] sm:$0xff] %v2602_v51 }
 0x64e   : > { %2632 = vst [vmem:[%s4478_s29 + $0xd0] sm:$0xff] %v2600_v34 }
 0x652   : > { %v2572_v8 = vpop.permute.xlu1 %2571 }
 0x653   : > { %v2605_v57 = vmul.f32 %v2572_v8, %v2250_v50 }
 0x655   : > { %2637 = vst [vmem:[%s4478_s29 + $0xf8] sm:$0xff] %v2605_v57 }
 0x689   : > { %v2567_v31 = vpop.permute.xlu2 %2566 }
 0x68a   : > { %v2604_v24 = vmul.f32 %v2567_v31, %v2249_v62 }
 0x68c   : > { %2636 = vst [vmem:[%s4478_s29 + $0xf0] sm:$0xff] %v2604_v24 }
 0x68e   : > { %v2562_v27 = vpop.permute.xlu0 %2561 }
 0x68f   : > { %v2603_v3 = vmul.f32 %v2562_v27, %v2248_v56 }
 0x691   : > { %2635 = vst [vmem:[%s4478_s29 + $0xe8] sm:$0xff] %v2603_v3 }
 0x692 PF: > { %s13_s14 = sadd.s32 1, %s3331_s14   ;;  %s4857_s12 = smov %s3327_s13 }
 0x693   : > { %p10_p5 = scmp.ge.s32.totalorder %s13_s14, 4   ;;  %s4858_s13 = smov %s4860_s15 }
 0x695   :  { %12 = sbr.rel (!%p10_p5) target bundleno = 2 (0x2), region = 76 }

</bundles_post_ra>
